<compile_context>
chip_gen: v7x
topology: tpu7x:2x2x1
jax: 0.10.0
libtpu: 0.0.40
codegen_flags: <defaults>
</compile_context>

<pallas_src>
import functools

import jax
import jax.numpy as jnp
from jax.experimental import pallas as pl
from jax.experimental.pallas import tpu as pltpu

BN_EPS = 1e-5

# Contract the trailing (feature) dim of both operands: (O, K) x (Tb, K) -> (O, Tb).
_NT_DIMS = (((1,), (1,)), ((), ()))


def _make_stats_kernel(n_valid: int, tb: int, n_tiles: int):
    """Pass 1: per-split partial sum / sum-of-squares of pre-BN h2 over the batch."""

    def kernel(x_ref, w1_ref, b1_ref, w2_ref, b2_ref, s_ref, ssq_ref):
        c = pl.program_id(0)                  # core split (parallel across v7x TCs)
        j = pl.program_id(1)                  # tile within this split (arbitrary)
        g = c * pl.num_programs(1) + j        # global (unclamped) batch-tile index

        @pl.when(j == 0)
        def _():
            s_ref[...] = jnp.zeros_like(s_ref)
            ssq_ref[...] = jnp.zeros_like(ssq_ref)

        x = x_ref[...]                                                # (tb, 4) f32
        # layer1: Linear(4 -> 32) + ReLU, batch lands on the lane axis.
        h1 = jax.lax.dot_general(w1_ref[...], x, _NT_DIMS,
                                 preferred_element_type=jnp.float32) + b1_ref[...]
        h1 = jnp.maximum(h1, 0.0)                                     # (32, tb)
        # layer2 pre-BN: Linear(32 -> 32)
        h2 = jnp.dot(w2_ref[...], h1,
                     preferred_element_type=jnp.float32) + b2_ref[...]

        def accumulate(vals):
            s_ref[...] += jnp.sum(vals, axis=1, keepdims=True)[None]         # (1,32,1)
            ssq_ref[...] += jnp.sum(vals * vals, axis=1, keepdims=True)[None]

        # Full tiles: no masking work at all.
        @pl.when(g < n_tiles - 1)
        def _():
            accumulate(h2)

        # Last (possibly partial) tile, plus clamped duplicate tiles when the
        # tile count is odd: mask out out-of-range batch columns.
        @pl.when(g >= n_tiles - 1)
        def _():
            col = jax.lax.broadcasted_iota(jnp.int32, h2.shape, 1) + g * tb
            accumulate(jnp.where(col < n_valid, h2, 0.0))

    return kernel


def _make_fwd_kernel(batch_size: int):
    """Pass 2: full forward pass.  The BN finalize is only 32 elements, so it is
    recomputed per tile in-kernel, keeping the batch-tile axis freely parallel."""
    inv_b = 1.0 / float(batch_size)

    def kernel(x_ref, w1_ref, b1_ref, w2_ref, b2_ref, gamma_ref, beta_ref,
               w3_ref, b3_ref, s_ref, ssq_ref, o_ref):
        # ---- BN finalize: combine per-split partial stats -> scale / shift ----
        sp = s_ref[...]                              # (2, 32, 1)
        sq = ssq_ref[...]
        mean = (sp[0] + sp[1]) * inv_b               # (32, 1)
        # TODO(synk): E[x^2] - mean^2 in f32 is cancellation-prone for very large
        # B or |mean| >> std; switch to centered (Chan) partials if that matters.
        var = jnp.maximum((sq[0] + sq[1]) * inv_b - mean * mean, 0.0)
        scale = gamma_ref[...] * jax.lax.rsqrt(var + BN_EPS)
        shift = beta_ref[...] - mean * scale

        # ---- forward pass, batch on the lane axis ----
        x = x_ref[...]                                                # (tb, 4) f32
        h1 = jax.lax.dot_general(w1_ref[...], x, _NT_DIMS,
                                 preferred_element_type=jnp.float32) + b1_ref[...]
        h1 = jnp.maximum(h1, 0.0)                                     # (32, tb)
        h2 = jnp.dot(w2_ref[...], h1,
                     preferred_element_type=jnp.float32) + b2_ref[...]
        h2 = jnp.maximum(h2 * scale + shift, 0.0)                     # BN + ReLU
        out = jnp.dot(w3_ref[...], h2,
                      preferred_element_type=jnp.float32) + b3_ref[...]  # (2, tb)
        o_ref[...] = (2.0 * jax.nn.sigmoid(out)).astype(o_ref.dtype)

    return kernel


def fully_connected(x, params, *, tb: int = 32768, batch_major_output: bool = True):
    """x: (B, 4) float32.  Returns (B, 2) float32, matching the PyTorch module.

    tb: batch tile in lanes (multiple of 128), clamped so a tile never vastly
    exceeds the batch.  Default 32768 amortises per-grid-step pipeline overhead;
    ~16K is enough on v5e, keep <= 32768 on v7x (64 MiB VMEM per TensorCore).
    batch_major_output=False returns the lane-dense (2, B) kernel layout and
    skips one small XLA transpose pass over the output.
    """
    w1, b1, w2, b2, gamma, beta, w3, b3 = params  # weights (out, in), vectors (out, 1)
    B = x.shape[0]
    assert tb % 128 == 0, tb
    tb = max(128, min(tb, pl.cdiv(B, 128) * 128))
    n_tiles = pl.cdiv(B, tb)
    tiles_per_split = pl.cdiv(n_tiles, 2)         # 2-way split for v7x's two TCs

    x = x.astype(jnp.float32)

    # ~450 B of f32 working set per lane per step (double-buffered x/out tiles
    # plus (32, tb) temporaries); give the compiler headroom but stay well under
    # the 64 MiB v7x VMEM when tb <= 32768.
    vmem_limit = int(min(100 * 2**20, max(32 * 2**20, 896 * tb)))

    const2 = lambda c, j: (0, 0)
    const1 = lambda i: (0, 0)

    # ---- Pass 1: per-split partial batch statistics of h2 (pre-BN) ----------
    def x_stats_map(c, j):
        # Clamp so odd tile counts stay in range; duplicated tiles are fully
        # masked in-kernel (their iota columns land past the batch).
        return (jnp.minimum(c * tiles_per_split + j, n_tiles - 1), 0)

    s_part, ssq_part = pl.pallas_call(
        _make_stats_kernel(B, tb, n_tiles),
        out_shape=(jax.ShapeDtypeStruct((2, 32, 1), jnp.float32),
                   jax.ShapeDtypeStruct((2, 32, 1), jnp.float32)),
        grid=(2, tiles_per_split),
        in_specs=[
            pl.BlockSpec((tb, 4), x_stats_map),      # x tile, natural layout
            pl.BlockSpec((32, 4), const2),           # resident params
            pl.BlockSpec((32, 1), const2),
            pl.BlockSpec((32, 32), const2),
            pl.BlockSpec((32, 1), const2),
        ],
        out_specs=(pl.BlockSpec((1, 32, 1), lambda c, j: (c, 0, 0)),
                   pl.BlockSpec((1, 32, 1), lambda c, j: (c, 0, 0))),
        compiler_params=pltpu.CompilerParams(
            dimension_semantics=("parallel", "arbitrary"),
            vmem_limit_bytes=vmem_limit),
    )(x, w1, b1, w2, b2)

    # ---- Pass 2: forward pass with in-kernel BN finalize, lane-dense output --
    y = pl.pallas_call(
        _make_fwd_kernel(B),
        out_shape=jax.ShapeDtypeStruct((2, B), jnp.float32),
        grid=(n_tiles,),
        in_specs=[
            pl.BlockSpec((tb, 4), lambda i: (i, 0)),     # x tile, natural layout
            pl.BlockSpec((32, 4), const1),
            pl.BlockSpec((32, 1), const1),
            pl.BlockSpec((32, 32), const1),
            pl.BlockSpec((32, 1), const1),
            pl.BlockSpec((32, 1), const1),               # gamma
            pl.BlockSpec((32, 1), const1),               # beta
            pl.BlockSpec((2, 32), const1),
            pl.BlockSpec((2, 1), const1),
            pl.BlockSpec((2, 32, 1), lambda i: (0, 0, 0)),   # partial sums
            pl.BlockSpec((2, 32, 1), lambda i: (0, 0, 0)),   # partial sum-sq
        ],
        out_specs=pl.BlockSpec((2, tb), lambda i: (0, i)),
        compiler_params=pltpu.CompilerParams(
            dimension_semantics=("parallel",),
            vmem_limit_bytes=vmem_limit),
    )(x, w1, b1, w2, b2, gamma, beta, w3, b3, s_part, ssq_part)

    return y.T if batch_major_output else y


def init_params(key):
    """PyTorch-like init: Linear weight/bias uniform +/- 1/sqrt(fan_in);
    weights stored (out, in), vectors (out, 1); BN gamma=1, beta=0."""
    k1, k2, k3, k4, k5, k6 = jax.random.split(key, 6)

    def lin(kw, kb, fan_in, fan_out):
        bound = 1.0 / float(fan_in) ** 0.5
        w = jax.random.uniform(kw, (fan_out, fan_in), jnp.float32, -bound, bound)
        b = jax.random.uniform(kb, (fan_out, 1), jnp.float32, -bound, bound)
        return w, b

    w1, b1 = lin(k1, k2, 4, 32)
    w2, b2 = lin(k3, k4, 32, 32)
    w3, b3 = lin(k5, k6, 32, 2)
    gamma = jnp.ones((32, 1), jnp.float32)
    beta = jnp.zeros((32, 1), jnp.float32)
    return (w1, b1, w2, b2, gamma, beta, w3, b3)


def reference(x, params):
    """Pure-JAX reference of the same forward pass (training-mode BN), computed
    at highest matmul precision."""
    w1, b1, w2, b2, gamma, beta, w3, b3 = params
    hi = jax.lax.Precision.HIGHEST
    h1 = jnp.maximum(jnp.dot(x, w1.T, precision=hi) + b1.T, 0.0)
    h2 = jnp.dot(h1, w2.T, precision=hi) + b2.T
    mean = jnp.mean(h2, axis=0, keepdims=True)
    var = jnp.mean((h2 - mean) ** 2, axis=0, keepdims=True)     # biased variance
    h2n = jnp.maximum((h2 - mean) * jax.lax.rsqrt(var + BN_EPS) * gamma.T + beta.T, 0.0)
    out = jnp.dot(h2n, w3.T, precision=hi) + b3.T
    return 2.0 * jax.nn.sigmoid(out)


# TODO(synk): BatchNorm1d running_mean / running_var buffer updates are a
# training-time side effect not reflected in the returned tensor; not produced.

if __name__ == "__main__":
    key = jax.random.PRNGKey(0)
    kx, kp = jax.random.split(key)
    params = init_params(kp)

    # B chosen so that with tb=128 there are 5 tiles (odd count) and a partial
    # last tile -> exercises the 2-way core split clamp and the masked tail.
    B = 600
    x = jax.random.normal(kx, (B, 4), jnp.float32)
    ref = reference(x, params)

    # Small-tile config: multiple grid steps, clamped split, partial last tile.
    fc_small = jax.jit(functools.partial(fully_connected, tb=128))
    out = jax.block_until_ready(fc_small(x, params))
    assert out.shape == (B, 2), out.shape
    err = float(jnp.max(jnp.abs(out - ref)))
    assert err < 2e-2, err

    # Default (large-tile) config: tb is clamped down to the small batch here.
    fc_default = jax.jit(fully_connected)
    out2 = jax.block_until_ready(fc_default(x, params))
    err2 = float(jnp.max(jnp.abs(out2 - ref)))
    assert err2 < 2e-2, err2

    print("KERNEL_OK")
</pallas_src>

<mosaic_0001>
module attributes {stable_mosaic.version = 11 : i64} {
  func.func @kernel(%arg0: i32, %arg1: memref<128x4xf32, #tpu.memory_space<vmem>>, %arg2: memref<32x4xf32, #tpu.memory_space<vmem>>, %arg3: memref<32x1xf32, #tpu.memory_space<vmem>>, %arg4: memref<32x32xf32, #tpu.memory_space<vmem>>, %arg5: memref<32x1xf32, #tpu.memory_space<vmem>>, %arg6: memref<32x1xf32, #tpu.memory_space<vmem>>, %arg7: memref<32x1xf32, #tpu.memory_space<vmem>>, %arg8: memref<2x32xf32, #tpu.memory_space<vmem>>, %arg9: memref<2x1xf32, #tpu.memory_space<vmem>>, %arg10: memref<2x32x1xf32, #tpu.memory_space<vmem>>, %arg11: memref<2x32x1xf32, #tpu.memory_space<vmem>>, %arg12: memref<2x128xf32, #tpu.memory_space<vmem>>) attributes {dimension_semantics = [#tpu.dimension_semantics<parallel>], iteration_bounds = array<i64: 5>, scalar_prefetch = 0 : i64, scratch_operands = 0 : i64, tpu.core_type = #tpu.core_type<tc>, window_params = [{transform_indices = @transform_0, window_bounds = array<i64: 128, 4>}, {pipeline_mode = #tpu.pipeline_mode<synchronous>, transform_indices = @transform_1, window_bounds = array<i64: 32, 4>}, {pipeline_mode = #tpu.pipeline_mode<synchronous>, transform_indices = @transform_2, window_bounds = array<i64: 32, 1>}, {pipeline_mode = #tpu.pipeline_mode<synchronous>, transform_indices = @transform_3, window_bounds = array<i64: 32, 32>}, {pipeline_mode = #tpu.pipeline_mode<synchronous>, transform_indices = @transform_4, window_bounds = array<i64: 32, 1>}, {pipeline_mode = #tpu.pipeline_mode<synchronous>, transform_indices = @transform_5, window_bounds = array<i64: 32, 1>}, {pipeline_mode = #tpu.pipeline_mode<synchronous>, transform_indices = @transform_6, window_bounds = array<i64: 32, 1>}, {pipeline_mode = #tpu.pipeline_mode<synchronous>, transform_indices = @transform_7, window_bounds = array<i64: 2, 32>}, {pipeline_mode = #tpu.pipeline_mode<synchronous>, transform_indices = @transform_8, window_bounds = array<i64: 2, 1>}, {pipeline_mode = #tpu.pipeline_mode<synchronous>, transform_indices = @transform_9, window_bounds = array<i64: 2, 32, 1>}, {pipeline_mode = #tpu.pipeline_mode<synchronous>, transform_indices = @transform_10, window_bounds = array<i64: 2, 32, 1>}, {transform_indices = @transform_11, window_bounds = array<i64: 2, 128>}]} {
    %c0 = arith.constant 0 : index
    %c0_0 = arith.constant 0 : index
    %c0_1 = arith.constant 0 : index
    %0 = vector.load %arg10[%c0, %c0_0, %c0_1] : memref<2x32x1xf32, #tpu.memory_space<vmem>>, vector<2x32x1xf32>
    %c0_2 = arith.constant 0 : index
    %c0_3 = arith.constant 0 : index
    %c0_4 = arith.constant 0 : index
    %1 = vector.load %arg11[%c0_2, %c0_3, %c0_4] : memref<2x32x1xf32, #tpu.memory_space<vmem>>, vector<2x32x1xf32>
    %2 = vector.extract_strided_slice %0 {offsets = [0, 0, 0], sizes = [1, 32, 1], strides = [1, 1, 1]} : vector<2x32x1xf32> to vector<1x32x1xf32>
    %3 = vector.shape_cast %2 : vector<1x32x1xf32> to vector<32x1xf32>
    %4 = vector.extract_strided_slice %0 {offsets = [1, 0, 0], sizes = [1, 32, 1], strides = [1, 1, 1]} : vector<2x32x1xf32> to vector<1x32x1xf32>
    %5 = vector.shape_cast %4 : vector<1x32x1xf32> to vector<32x1xf32>
    %6 = arith.addf %3, %5 : vector<32x1xf32>
    %cst = arith.constant 0.00166666671 : f32
    %7 = vector.broadcast %cst : f32 to vector<32x1xf32>
    %8 = arith.mulf %6, %7 : vector<32x1xf32>
    %9 = vector.extract_strided_slice %1 {offsets = [0, 0, 0], sizes = [1, 32, 1], strides = [1, 1, 1]} : vector<2x32x1xf32> to vector<1x32x1xf32>
    %10 = vector.shape_cast %9 : vector<1x32x1xf32> to vector<32x1xf32>
    %11 = vector.extract_strided_slice %1 {offsets = [1, 0, 0], sizes = [1, 32, 1], strides = [1, 1, 1]} : vector<2x32x1xf32> to vector<1x32x1xf32>
    %12 = vector.shape_cast %11 : vector<1x32x1xf32> to vector<32x1xf32>
    %13 = arith.addf %10, %12 : vector<32x1xf32>
    %cst_5 = arith.constant 0.00166666671 : f32
    %14 = vector.broadcast %cst_5 : f32 to vector<32x1xf32>
    %15 = arith.mulf %13, %14 : vector<32x1xf32>
    %16 = arith.mulf %8, %8 : vector<32x1xf32>
    %17 = arith.subf %15, %16 : vector<32x1xf32>
    %cst_6 = arith.constant 0.000000e+00 : f32
    %18 = vector.broadcast %cst_6 : f32 to vector<32x1xf32>
    %19 = arith.maximumf %17, %18 : vector<32x1xf32>
    %c0_7 = arith.constant 0 : index
    %c0_8 = arith.constant 0 : index
    %20 = vector.load %arg6[%c0_7, %c0_8] : memref<32x1xf32, #tpu.memory_space<vmem>>, vector<32x1xf32>
    %cst_9 = arith.constant 9.99999974E-6 : f32
    %21 = vector.broadcast %cst_9 : f32 to vector<32x1xf32>
    %22 = arith.addf %19, %21 : vector<32x1xf32>
    %23 = math.rsqrt %22 : vector<32x1xf32>
    %24 = arith.mulf %20, %23 : vector<32x1xf32>
    %c0_10 = arith.constant 0 : index
    %c0_11 = arith.constant 0 : index
    %25 = vector.load %arg7[%c0_10, %c0_11] : memref<32x1xf32, #tpu.memory_space<vmem>>, vector<32x1xf32>
    %26 = arith.mulf %8, %24 : vector<32x1xf32>
    %27 = arith.subf %25, %26 : vector<32x1xf32>
    %c0_12 = arith.constant 0 : index
    %c0_13 = arith.constant 0 : index
    %28 = vector.load %arg1[%c0_12, %c0_13] : memref<128x4xf32, #tpu.memory_space<vmem>>, vector<128x4xf32>
    %c0_14 = arith.constant 0 : index
    %c0_15 = arith.constant 0 : index
    %29 = vector.load %arg2[%c0_14, %c0_15] : memref<32x4xf32, #tpu.memory_space<vmem>>, vector<32x4xf32>
    %cst_16 = arith.constant dense<0.000000e+00> : vector<32x128xf32>
    %30 = tpu.matmul %29, %28, %cst_16 {dimension_numbers = #tpu.dot_dimension_numbers<[1], [1], [0], [0], [0, 0, 1, 0], [], []>} : vector<32x4xf32>, vector<128x4xf32>, vector<32x128xf32> -> vector<32x128xf32>
    %c0_17 = arith.constant 0 : index
    %c0_18 = arith.constant 0 : index
    %31 = vector.load %arg3[%c0_17, %c0_18] : memref<32x1xf32, #tpu.memory_space<vmem>>, vector<32x1xf32>
    %32 = vector.broadcast %31 : vector<32x1xf32> to vector<32x128xf32>
    %33 = arith.addf %30, %32 : vector<32x128xf32>
    %cst_19 = arith.constant 0.000000e+00 : f32
    %34 = vector.broadcast %cst_19 : f32 to vector<32x128xf32>
    %35 = arith.maximumf %33, %34 : vector<32x128xf32>
    %c0_20 = arith.constant 0 : index
    %c0_21 = arith.constant 0 : index
    %36 = vector.load %arg4[%c0_20, %c0_21] : memref<32x32xf32, #tpu.memory_space<vmem>>, vector<32x32xf32>
    %cst_22 = arith.constant dense<0.000000e+00> : vector<32x128xf32>
    %37 = tpu.matmul %36, %35, %cst_22 {dimension_numbers = #tpu.dot_dimension_numbers<[1], [0], [0], [1], [0, 0, 1, 1], [], []>} : vector<32x32xf32>, vector<32x128xf32>, vector<32x128xf32> -> vector<32x128xf32>
    %c0_23 = arith.constant 0 : index
    %c0_24 = arith.constant 0 : index
    %38 = vector.load %arg5[%c0_23, %c0_24] : memref<32x1xf32, #tpu.memory_space<vmem>>, vector<32x1xf32>
    %39 = vector.broadcast %38 : vector<32x1xf32> to vector<32x128xf32>
    %40 = arith.addf %37, %39 : vector<32x128xf32>
    %41 = vector.broadcast %24 : vector<32x1xf32> to vector<32x128xf32>
    %42 = arith.mulf %40, %41 : vector<32x128xf32>
    %43 = vector.broadcast %27 : vector<32x1xf32> to vector<32x128xf32>
    %44 = arith.addf %42, %43 : vector<32x128xf32>
    %cst_25 = arith.constant 0.000000e+00 : f32
    %45 = vector.broadcast %cst_25 : f32 to vector<32x128xf32>
    %46 = arith.maximumf %44, %45 : vector<32x128xf32>
    %c0_26 = arith.constant 0 : index
    %c0_27 = arith.constant 0 : index
    %47 = vector.load %arg8[%c0_26, %c0_27] : memref<2x32xf32, #tpu.memory_space<vmem>>, vector<2x32xf32>
    %cst_28 = arith.constant dense<0.000000e+00> : vector<2x128xf32>
    %48 = tpu.matmul %47, %46, %cst_28 {dimension_numbers = #tpu.dot_dimension_numbers<[1], [0], [0], [1], [0, 0, 1, 1], [], []>} : vector<2x32xf32>, vector<32x128xf32>, vector<2x128xf32> -> vector<2x128xf32>
    %c0_29 = arith.constant 0 : index
    %c0_30 = arith.constant 0 : index
    %49 = vector.load %arg9[%c0_29, %c0_30] : memref<2x1xf32, #tpu.memory_space<vmem>>, vector<2x1xf32>
    %50 = vector.broadcast %49 : vector<2x1xf32> to vector<2x128xf32>
    %51 = arith.addf %48, %50 : vector<2x128xf32>
    %52 = arith.negf %51 : vector<2x128xf32>
    %53 = math.exp %52 : vector<2x128xf32>
    %cst_31 = arith.constant 1.000000e+00 : f32
    %54 = vector.broadcast %cst_31 : f32 to vector<2x128xf32>
    %55 = arith.addf %54, %53 : vector<2x128xf32>
    %56 = arith.divf %54, %55 : vector<2x128xf32>
    %cst_32 = arith.constant 2.000000e+00 : f32
    %57 = vector.broadcast %cst_32 : f32 to vector<2x128xf32>
    %58 = arith.mulf %57, %56 : vector<2x128xf32>
    %c0_33 = arith.constant 0 : index
    %c0_34 = arith.constant 0 : index
    %59 = vector.load %arg12[%c0_33, %c0_34] : memref<2x128xf32, #tpu.memory_space<vmem>>, vector<2x128xf32>
    tpu.vector_store %arg12[%c0_33, %c0_34], %58 {strides = array<i32>} : memref<2x128xf32, #tpu.memory_space<vmem>>, vector<2x128xf32>,
    return
  }
  func.func @transform_0(%arg0: i32) -> (i32, i32) {
    %c0_i32 = arith.constant 0 : i32
    %c0_i32_0 = arith.constant 0 : i32
    return %arg0, %c0_i32 : i32, i32
  }
  func.func @transform_1(%arg0: i32) -> (i32, i32) {
    %c0_i32 = arith.constant 0 : i32
    %c0_i32_0 = arith.constant 0 : i32
    %c0_i32_1 = arith.constant 0 : i32
    return %c0_i32, %c0_i32_0 : i32, i32
  }
  func.func @transform_2(%arg0: i32) -> (i32, i32) {
    %c0_i32 = arith.constant 0 : i32
    %c0_i32_0 = arith.constant 0 : i32
    %c0_i32_1 = arith.constant 0 : i32
    return %c0_i32, %c0_i32_0 : i32, i32
  }
  func.func @transform_3(%arg0: i32) -> (i32, i32) {
    %c0_i32 = arith.constant 0 : i32
    %c0_i32_0 = arith.constant 0 : i32
    %c0_i32_1 = arith.constant 0 : i32
    return %c0_i32, %c0_i32_0 : i32, i32
  }
  func.func @transform_4(%arg0: i32) -> (i32, i32) {
    %c0_i32 = arith.constant 0 : i32
    %c0_i32_0 = arith.constant 0 : i32
    %c0_i32_1 = arith.constant 0 : i32
    return %c0_i32, %c0_i32_0 : i32, i32
  }
  func.func @transform_5(%arg0: i32) -> (i32, i32) {
    %c0_i32 = arith.constant 0 : i32
    %c0_i32_0 = arith.constant 0 : i32
    %c0_i32_1 = arith.constant 0 : i32
    return %c0_i32, %c0_i32_0 : i32, i32
  }
  func.func @transform_6(%arg0: i32) -> (i32, i32) {
    %c0_i32 = arith.constant 0 : i32
    %c0_i32_0 = arith.constant 0 : i32
    %c0_i32_1 = arith.constant 0 : i32
    return %c0_i32, %c0_i32_0 : i32, i32
  }
  func.func @transform_7(%arg0: i32) -> (i32, i32) {
    %c0_i32 = arith.constant 0 : i32
    %c0_i32_0 = arith.constant 0 : i32
    %c0_i32_1 = arith.constant 0 : i32
    return %c0_i32, %c0_i32_0 : i32, i32
  }
  func.func @transform_8(%arg0: i32) -> (i32, i32) {
    %c0_i32 = arith.constant 0 : i32
    %c0_i32_0 = arith.constant 0 : i32
    %c0_i32_1 = arith.constant 0 : i32
    return %c0_i32, %c0_i32_0 : i32, i32
  }
  func.func @transform_9(%arg0: i32) -> (i32, i32, i32) {
    %c0_i32 = arith.constant 0 : i32
    %c0_i32_0 = arith.constant 0 : i32
    %c0_i32_1 = arith.constant 0 : i32
    %c0_i32_2 = arith.constant 0 : i32
    return %c0_i32, %c0_i32_0, %c0_i32_1 : i32, i32, i32
  }
  func.func @transform_10(%arg0: i32) -> (i32, i32, i32) {
    %c0_i32 = arith.constant 0 : i32
    %c0_i32_0 = arith.constant 0 : i32
    %c0_i32_1 = arith.constant 0 : i32
    %c0_i32_2 = arith.constant 0 : i32
    return %c0_i32, %c0_i32_0, %c0_i32_1 : i32, i32, i32
  }
  func.func @transform_11(%arg0: i32) -> (i32, i32) {
    %c0_i32 = arith.constant 0 : i32
    %c0_i32_0 = arith.constant 0 : i32
    return %c0_i32, %arg0 : i32, i32
  }
}

module attributes {stable_mosaic.version = 11 : i64} {
  func.func @kernel(%arg0: i32, %arg1: i32, %arg2: memref<128x4xf32, #tpu.memory_space<vmem>>, %arg3: memref<32x4xf32, #tpu.memory_space<vmem>>, %arg4: memref<32x1xf32, #tpu.memory_space<vmem>>, %arg5: memref<32x32xf32, #tpu.memory_space<vmem>>, %arg6: memref<32x1xf32, #tpu.memory_space<vmem>>, %arg7: memref<1x32x1xf32, #tpu.memory_space<vmem>>, %arg8: memref<1x32x1xf32, #tpu.memory_space<vmem>>) attributes {dimension_semantics = [#tpu.dimension_semantics<parallel>, #tpu.dimension_semantics<arbitrary>], iteration_bounds = array<i64: 2, 3>, scalar_prefetch = 0 : i64, scratch_operands = 0 : i64, tpu.core_type = #tpu.core_type<tc>, window_params = [{transform_indices = @transform_0, window_bounds = array<i64: 128, 4>}, {pipeline_mode = #tpu.pipeline_mode<synchronous>, transform_indices = @transform_1, window_bounds = array<i64: 32, 4>}, {pipeline_mode = #tpu.pipeline_mode<synchronous>, transform_indices = @transform_2, window_bounds = array<i64: 32, 1>}, {pipeline_mode = #tpu.pipeline_mode<synchronous>, transform_indices = @transform_3, window_bounds = array<i64: 32, 32>}, {pipeline_mode = #tpu.pipeline_mode<synchronous>, transform_indices = @transform_4, window_bounds = array<i64: 32, 1>}, {transform_indices = @transform_5, window_bounds = array<i64: 1, 32, 1>}, {transform_indices = @transform_6, window_bounds = array<i64: 1, 32, 1>}]} {
    %c3_i32 = arith.constant 3 : i32
    %0 = arith.muli %arg0, %c3_i32 : i32
    %1 = arith.addi %0, %arg1 : i32
    %c0_i32 = arith.constant 0 : i32
    %2 = arith.cmpi eq, %arg1, %c0_i32 : i32
    %3 = arith.extui %2 : i1 to i32
    %c0_i32_0 = arith.constant 0 : i32
    %4 = arith.cmpi ne, %3, %c0_i32_0 : i32
    scf.if %4 {
      %cst_15 = arith.constant 0.000000e+00 : f32
      %24 = vector.broadcast %cst_15 : f32 to vector<1x32x1xf32>
      %c0_16 = arith.constant 0 : index
      %c0_17 = arith.constant 0 : index
      %c0_18 = arith.constant 0 : index
      %25 = vector.load %arg7[%c0_16, %c0_17, %c0_18] : memref<1x32x1xf32, #tpu.memory_space<vmem>>, vector<1x32x1xf32>
      tpu.vector_store %arg7[%c0_16, %c0_17, %c0_18], %24 {strides = array<i32>} : memref<1x32x1xf32, #tpu.memory_space<vmem>>, vector<1x32x1xf32>,
      %cst_19 = arith.constant 0.000000e+00 : f32
      %26 = vector.broadcast %cst_19 : f32 to vector<1x32x1xf32>
      %c0_20 = arith.constant 0 : index
      %c0_21 = arith.constant 0 : index
      %c0_22 = arith.constant 0 : index
      %27 = vector.load %arg8[%c0_20, %c0_21, %c0_22] : memref<1x32x1xf32, #tpu.memory_space<vmem>>, vector<1x32x1xf32>
      tpu.vector_store %arg8[%c0_20, %c0_21, %c0_22], %26 {strides = array<i32>} : memref<1x32x1xf32, #tpu.memory_space<vmem>>, vector<1x32x1xf32>,
    } else {
    }
    %c0 = arith.constant 0 : index
    %c0_1 = arith.constant 0 : index
    %5 = vector.load %arg2[%c0, %c0_1] : memref<128x4xf32, #tpu.memory_space<vmem>>, vector<128x4xf32>
    %c0_2 = arith.constant 0 : index
    %c0_3 = arith.constant 0 : index
    %6 = vector.load %arg3[%c0_2, %c0_3] : memref<32x4xf32, #tpu.memory_space<vmem>>, vector<32x4xf32>
    %cst = arith.constant dense<0.000000e+00> : vector<32x128xf32>
    %7 = tpu.matmul %6, %5, %cst {dimension_numbers = #tpu.dot_dimension_numbers<[1], [1], [0], [0], [0, 0, 1, 0], [], []>} : vector<32x4xf32>, vector<128x4xf32>, vector<32x128xf32> -> vector<32x128xf32>
    %c0_4 = arith.constant 0 : index
    %c0_5 = arith.constant 0 : index
    %8 = vector.load %arg4[%c0_4, %c0_5] : memref<32x1xf32, #tpu.memory_space<vmem>>, vector<32x1xf32>
    %9 = vector.broadcast %8 : vector<32x1xf32> to vector<32x128xf32>
    %10 = arith.addf %7, %9 : vector<32x128xf32>
    %cst_6 = arith.constant 0.000000e+00 : f32
    %11 = vector.broadcast %cst_6 : f32 to vector<32x128xf32>
    %12 = arith.maximumf %10, %11 : vector<32x128xf32>
    %c0_7 = arith.constant 0 : index
    %c0_8 = arith.constant 0 : index
    %13 = vector.load %arg5[%c0_7, %c0_8] : memref<32x32xf32, #tpu.memory_space<vmem>>, vector<32x32xf32>
    %cst_9 = arith.constant dense<0.000000e+00> : vector<32x128xf32>
    %14 = tpu.matmul %13, %12, %cst_9 {dimension_numbers = #tpu.dot_dimension_numbers<[1], [0], [0], [1], [0, 0, 1, 1], [], []>} : vector<32x32xf32>, vector<32x128xf32>, vector<32x128xf32> -> vector<32x128xf32>
    %c0_10 = arith.constant 0 : index
    %c0_11 = arith.constant 0 : index
    %15 = vector.load %arg6[%c0_10, %c0_11] : memref<32x1xf32, #tpu.memory_space<vmem>>, vector<32x1xf32>
    %16 = vector.broadcast %15 : vector<32x1xf32> to vector<32x128xf32>
    %17 = arith.addf %14, %16 : vector<32x128xf32>
    %c4_i32 = arith.constant 4 : i32
    %18 = arith.cmpi slt, %1, %c4_i32 : i32
    %19 = arith.extui %18 : i1 to i32
    %c0_i32_12 = arith.constant 0 : i32
    %20 = arith.cmpi ne, %19, %c0_i32_12 : i32
    scf.if %20 {
      %c0_15 = arith.constant 0 : index
      %c0_16 = arith.constant 0 : index
      %c0_17 = arith.constant 0 : index
      %24 = vector.load %arg7[%c0_15, %c0_16, %c0_17] : memref<1x32x1xf32, #tpu.memory_space<vmem>>, vector<1x32x1xf32>
      %cst_18 = arith.constant dense<0.000000e+00> : vector<32xf32>
      %25 = vector.multi_reduction <add>, %17, %cst_18 [1] : vector<32x128xf32> to vector<32xf32>
      %26 = vector.shape_cast %25 : vector<32xf32> to vector<32x1xf32>
      %27 = vector.shape_cast %26 : vector<32x1xf32> to vector<1x32x1xf32>
      %28 = arith.addf %24, %27 : vector<1x32x1xf32>
      %c0_19 = arith.constant 0 : index
      %c0_20 = arith.constant 0 : index
      %c0_21 = arith.constant 0 : index
      %29 = vector.load %arg7[%c0_19, %c0_20, %c0_21] : memref<1x32x1xf32, #tpu.memory_space<vmem>>, vector<1x32x1xf32>
      tpu.vector_store %arg7[%c0_19, %c0_20, %c0_21], %28 {strides = array<i32>} : memref<1x32x1xf32, #tpu.memory_space<vmem>>, vector<1x32x1xf32>,
      %c0_22 = arith.constant 0 : index
      %c0_23 = arith.constant 0 : index
      %c0_24 = arith.constant 0 : index
      %30 = vector.load %arg8[%c0_22, %c0_23, %c0_24] : memref<1x32x1xf32, #tpu.memory_space<vmem>>, vector<1x32x1xf32>
      %31 = arith.mulf %17, %17 : vector<32x128xf32>
      %cst_25 = arith.constant dense<0.000000e+00> : vector<32xf32>
      %32 = vector.multi_reduction <add>, %31, %cst_25 [1] : vector<32x128xf32> to vector<32xf32>
      %33 = vector.shape_cast %32 : vector<32xf32> to vector<32x1xf32>
      %34 = vector.shape_cast %33 : vector<32x1xf32> to vector<1x32x1xf32>
      %35 = arith.addf %30, %34 : vector<1x32x1xf32>
      %c0_26 = arith.constant 0 : index
      %c0_27 = arith.constant 0 : index
      %c0_28 = arith.constant 0 : index
      %36 = vector.load %arg8[%c0_26, %c0_27, %c0_28] : memref<1x32x1xf32, #tpu.memory_space<vmem>>, vector<1x32x1xf32>
      tpu.vector_store %arg8[%c0_26, %c0_27, %c0_28], %35 {strides = array<i32>} : memref<1x32x1xf32, #tpu.memory_space<vmem>>, vector<1x32x1xf32>,
    } else {
    }
    %c4_i32_13 = arith.constant 4 : i32
    %21 = arith.cmpi sge, %1, %c4_i32_13 : i32
    %22 = arith.extui %21 : i1 to i32
    %c0_i32_14 = arith.constant 0 : i32
    %23 = arith.cmpi ne, %22, %c0_i32_14 : i32
    scf.if %23 {
      %24 = tpu.iota {dimensions = array<i32: 1>} : vector<32x128xi32>
      %c128_i32 = arith.constant 128 : i32
      %25 = arith.muli %1, %c128_i32 : i32
      %26 = vector.broadcast %25 : i32 to vector<32x128xi32>
      %27 = arith.addi %24, %26 : vector<32x128xi32>
      %c600_i32 = arith.constant 600 : i32
      %28 = vector.broadcast %c600_i32 : i32 to vector<32x128xi32>
      %29 = arith.cmpi slt, %27, %28 : vector<32x128xi32>
      %cst_15 = arith.constant 0.000000e+00 : f32
      %30 = vector.broadcast %cst_15 : f32 to vector<32x128xf32>
      %31 = arith.select %29, %17, %30 : vector<32x128xi1>, vector<32x128xf32>
      %c0_16 = arith.constant 0 : index
      %c0_17 = arith.constant 0 : index
      %c0_18 = arith.constant 0 : index
      %32 = vector.load %arg7[%c0_16, %c0_17, %c0_18] : memref<1x32x1xf32, #tpu.memory_space<vmem>>, vector<1x32x1xf32>
      %cst_19 = arith.constant dense<0.000000e+00> : vector<32xf32>
      %33 = vector.multi_reduction <add>, %31, %cst_19 [1] : vector<32x128xf32> to vector<32xf32>
      %34 = vector.shape_cast %33 : vector<32xf32> to vector<32x1xf32>
      %35 = vector.shape_cast %34 : vector<32x1xf32> to vector<1x32x1xf32>
      %36 = arith.addf %32, %35 : vector<1x32x1xf32>
      %c0_20 = arith.constant 0 : index
      %c0_21 = arith.constant 0 : index
      %c0_22 = arith.constant 0 : index
      %37 = vector.load %arg7[%c0_20, %c0_21, %c0_22] : memref<1x32x1xf32, #tpu.memory_space<vmem>>, vector<1x32x1xf32>
      tpu.vector_store %arg7[%c0_20, %c0_21, %c0_22], %36 {strides = array<i32>} : memref<1x32x1xf32, #tpu.memory_space<vmem>>, vector<1x32x1xf32>,
      %c0_23 = arith.constant 0 : index
      %c0_24 = arith.constant 0 : index
      %c0_25 = arith.constant 0 : index
      %38 = vector.load %arg8[%c0_23, %c0_24, %c0_25] : memref<1x32x1xf32, #tpu.memory_space<vmem>>, vector<1x32x1xf32>
      %39 = arith.mulf %31, %31 : vector<32x128xf32>
      %cst_26 = arith.constant dense<0.000000e+00> : vector<32xf32>
      %40 = vector.multi_reduction <add>, %39, %cst_26 [1] : vector<32x128xf32> to vector<32xf32>
      %41 = vector.shape_cast %40 : vector<32xf32> to vector<32x1xf32>
      %42 = vector.shape_cast %41 : vector<32x1xf32> to vector<1x32x1xf32>
      %43 = arith.addf %38, %42 : vector<1x32x1xf32>
      %c0_27 = arith.constant 0 : index
      %c0_28 = arith.constant 0 : index
      %c0_29 = arith.constant 0 : index
      %44 = vector.load %arg8[%c0_27, %c0_28, %c0_29] : memref<1x32x1xf32, #tpu.memory_space<vmem>>, vector<1x32x1xf32>
      tpu.vector_store %arg8[%c0_27, %c0_28, %c0_29], %43 {strides = array<i32>} : memref<1x32x1xf32, #tpu.memory_space<vmem>>, vector<1x32x1xf32>,
    } else {
    }
    return
  }
  func.func @transform_0(%arg0: i32, %arg1: i32) -> (i32, i32) {
    %c3_i32 = arith.constant 3 : i32
    %0 = arith.muli %arg0, %c3_i32 : i32
    %1 = arith.addi %0, %arg1 : i32
    %c4_i32 = arith.constant 4 : i32
    %2 = arith.minsi %1, %c4_i32 : i32
    %c0_i32 = arith.constant 0 : i32
    %c0_i32_0 = arith.constant 0 : i32
    return %2, %c0_i32 : i32, i32
  }
  func.func @transform_1(%arg0: i32, %arg1: i32) -> (i32, i32) {
    %c0_i32 = arith.constant 0 : i32
    %c0_i32_0 = arith.constant 0 : i32
    %c0_i32_1 = arith.constant 0 : i32
    return %c0_i32, %c0_i32_0 : i32, i32
  }
  func.func @transform_2(%arg0: i32, %arg1: i32) -> (i32, i32) {
    %c0_i32 = arith.constant 0 : i32
    %c0_i32_0 = arith.constant 0 : i32
    %c0_i32_1 = arith.constant 0 : i32
    return %c0_i32, %c0_i32_0 : i32, i32
  }
  func.func @transform_3(%arg0: i32, %arg1: i32) -> (i32, i32) {
    %c0_i32 = arith.constant 0 : i32
    %c0_i32_0 = arith.constant 0 : i32
    %c0_i32_1 = arith.constant 0 : i32
    return %c0_i32, %c0_i32_0 : i32, i32
  }
  func.func @transform_4(%arg0: i32, %arg1: i32) -> (i32, i32) {
    %c0_i32 = arith.constant 0 : i32
    %c0_i32_0 = arith.constant 0 : i32
    %c0_i32_1 = arith.constant 0 : i32
    return %c0_i32, %c0_i32_0 : i32, i32
  }
  func.func @transform_5(%arg0: i32, %arg1: i32) -> (i32, i32, i32) {
    %c0_i32 = arith.constant 0 : i32
    %c0_i32_0 = arith.constant 0 : i32
    %c0_i32_1 = arith.constant 0 : i32
    return %arg0, %c0_i32, %c0_i32_0 : i32, i32, i32
  }
  func.func @transform_6(%arg0: i32, %arg1: i32) -> (i32, i32, i32) {
    %c0_i32 = arith.constant 0 : i32
    %c0_i32_0 = arith.constant 0 : i32
    %c0_i32_1 = arith.constant 0 : i32
    return %arg0, %c0_i32, %c0_i32_0 : i32, i32, i32
  }
}

</mosaic_0001>

<bundles_post_ra>
// kernel: fully_connected.2
= control target key start
LH: loop header
LB: loop body
LE: loop exit
PB: predicated region body
PF: predicated region fallthrough
CT: control target
= control target key end

     0   :  { %s1169_s21 = smov 0   ;;  %s1171_s22 = smov 0   ;;  %s1421_s0 = inlined_call_operand.vmem [shape: f32[600,4], index: 0, kind: input, shape index: {}]   ;;  %s1422_s1 = inlined_call_operand.vmem [shape: f32[32,4], index: 1, kind: input, shape index: {}]   ;;  %s1423_s2 = inlined_call_operand.vmem [shape: f32[32,1], index: 2, kind: input, shape index: {}]   ;;  %s1424_s3 = inlined_call_operand.vmem [shape: f32[32,32], index: 3, kind: input, shape index: {}]   ;;  %s1425_s4 = inlined_call_operand.vmem [shape: f32[32,1], index: 4, kind: input, shape index: {}]   ;;  %s1426_s5 = inlined_call_operand.vmem [shape: f32[2,32,1], index: 5, kind: output, shape index: {0}]   ;;  %s1427_s6 = inlined_call_operand.vmem [shape: f32[2,32,1], index: 6, kind: output, shape index: {1}]  }
   0x1   :  { %s1173_s23 = smov 0   ;;  %s1175_s24 = smov 0  }
   0x2   :  { %s1177_s25 = smov 0  }
   0x3 LB: > { %s26_s26 = sadd.s32 1, %s1122_s23  ;;  %s29_s27 = sadd.s32 1, %s1126_s24  ;;  %s1130_s25 = sphi %s1177_s25, %s17_s25   ;;  %s1126_s24 = sphi %s1175_s24, %s1433_s24   ;;  %s1122_s23 = sphi %s1173_s23, %s1432_s23   ;;  %s1118_s22 = sphi %s1171_s22, %s1431_s22   ;;  %s1114_s21 = sphi %s1169_s21, %s1430_s21  }
   0x4   : > { %p27_p0 = scmp.ge.s32.totalorder %s26_s26, 3  ;;  %p873_p1 = scmp.ge.s32.totalorder %s1130_s25, 1 }
   0x5   : > { %p252_p2 = scmp.lt.s32.totalorder %s1130_s25, 7 }
   0x6   : > { %s1435_s26 = smov (%p27_p0, %s26_s26), 0  ;;  %s1437_s27 = smov (!%p27_p0, %s29_s27), %s1126_s24 }
   0x7   : > { %p253_p3 = pnand %p873_p1, %p252_p2  ;;  %p31_p4 = scmp.ge.s32.totalorder %s1437_s27, 2 }
   0x8   : > { %s295_s28 = smul.u32 (!%p253_p3), 3, %s1118_s22  ;;  %p317_p5 = scmp.lt.s32.totalorder (!%p253_p3), %s1118_s22, 1 }
   0x9   : > { %s1439_s27 = smov (%p31_p4, %s1437_s27), 0  ;;  %256 = sbr.rel (%p253_p3) target bundleno = 860 (0x35c), region = 40 }
   0xa   : > { %s1202_s29 = sadd.s32 (!%p253_p3), %s1114_s21, %s295_s28  ;;  %p880_p8 = scmp.ne.s32.totalorder (!%p253_p3), %s1114_s21, 0 }
   0xb   : > { %p297_p6 = scmp.lt.s32.totalorder (!%p253_p3), %s1202_s29, 4 }
  0x10   : > { %s1441_s22 = smov (!%p317_p5, %s1118_s22), 1  ;;  %vm333_vm0 = vcmask (!%p880_p8), 7168   ;;  %v1132_v0 = vmov (!%p880_p8), 0.0  }
  0x11   : > { %s298_s30 = scalar_select %p297_p6, %s1202_s29, 4 }
  0x12   : > { %s910_s7 = sshll.u32 %s1441_s22, 5  ;;  %332 = sbr.rel (%p880_p8) target bundleno = 25 (0x19), region = 44 }
  0x13   : > { %s874_s8 = sshll.u32 %s298_s30, 4  ;;  %s1211_s11 = scalar_lea.vmem %s1426_s5, %s910_s7 }
  0x14   : > { %p304_p7 = scmp.lt.s32.totalorder %s874_s8, 74  ;;  %s1216_s14 = scalar_lea.vmem %s1427_s6, %s910_s7  ;;  %334 = vst.msk [vmem:[%s1211_s11] sm:$0xff] (!%p880_p8), %vm333_vm0, %v1132_v0  ;;  %335 = vst.msk [vmem:[%s1211_s11 + $0x8] sm:$0xff] (!%p880_p8), %vm333_vm0, %v1132_v0 }
  0x15   : > { %336 = vst.msk [vmem:[%s1211_s11 + $0x10] sm:$0xff] (!%p880_p8), %vm333_vm0, %v1132_v0  ;;  %337 = vst.msk [vmem:[%s1211_s11 + $0x18] sm:$0xff] (!%p880_p8), %vm333_vm0, %v1132_v0 }
  0x16   : > { %s1443_s8 = smov (!%p304_p7, %s874_s8), 74  ;;  %338 = vst.msk [vmem:[%s1216_s14] sm:$0xff] (!%p880_p8), %vm333_vm0, %v1132_v0  ;;  %339 = vst.msk [vmem:[%s1216_s14 + $0x8] sm:$0xff] (!%p880_p8), %vm333_vm0, %v1132_v0 }
  0x17   : > { %s875_s15 = sshll.u32 %s1443_s8, 3  ;;  %340 = vst.msk [vmem:[%s1216_s14 + $0x10] sm:$0xff] (!%p880_p8), %vm333_vm0, %v1132_v0  ;;  %341 = vst.msk [vmem:[%s1216_s14 + $0x18] sm:$0xff] (!%p880_p8), %vm333_vm0, %v1132_v0 }
  0x18   : > { %s1221_s18 = scalar_lea.vmem %s1421_s0, %s875_s15 }
  0x19 PF: > { %v342_v1 = vld [vmem:[%s1221_s18] sm:$0xff]  ;;  %v343_v2 = vld [vmem:[%s1221_s18 + $0x8] sm:$0xff]  ;;  %vm386_vm1 = vcmask 31744   ;;  %v344_v3 = vld [vmem:[%s1221_s18 + $0x10] sm:$0xff]  ;;  %v1133_v7 = vmov 0   ;;  %vm564_vm3 = vcmask 261120  }
  0x1a   : > { %v992_v4 = vpack.c.bf16 %v343_v2, %v342_v1  ;;  %vm1237_vm2 = vmpackc.low %vm386_vm1, %vm386_vm1  ;;  %v345_v6 = vld [vmem:[%s1221_s18 + $0x18] sm:$0xff]  ;;  %1090 = vset.pattern.permute.xlu0 %v1133_v7  ;;  %1091 = vset.pattern.permute.xlu1 %v1133_v7  ;;  %v358_v9 = vld [vmem:[%s1422_s1] sm:$0xff]  ;;  %p905_p9 = scmp.ge.s32.totalorder %s1202_s29, 4 }
  0x1b   : > { %v998_v8 = vpack.c.bf16 %v345_v6, %v344_v3  ;;  %v346_v10 = vld [vmem:[%s1221_s18 + $0x20] sm:$0xff]  ;;  %v347_v11 = vld [vmem:[%s1221_s18 + $0x28] sm:$0xff]  ;;  %972 = vmatprep.mubr.msk.f32.mxu0 %vm386_vm1, %v358_v9  ;;  %v364_v13 = vld [vmem:[%s1423_s2 + $0x10] sm:$0xff]  ;;  %vm682_vm4 = vcmask (!%p905_p9), 7168  }
  0x1c   : > { %994 = vmatprep.subr.msk.bf16.mxu0 %vm1237_vm2, %v992_v4  ;;  %v362_v12 = vld [vmem:[%s1423_s2] sm:$0xff]  ;;  %378 = vperm.xlu1 %1091, %v364_v13   ;;  %v1004_v14 = vpack.c.bf16 %v347_v11, %v346_v10  ;;  %v363_v15 = vld [vmem:[%s1423_s2 + $0x8] sm:$0xff]  ;;  %v365_v16 = vld [vmem:[%s1423_s2 + $0x18] sm:$0xff] }
  0x1d   : > { %997 = vmatpush3.bf16.xpose.msk.msra.mxu0 %vm1237_vm2, %v992_v4  ;;  %368 = vperm.xlu0 %1090, %v362_v12   ;;  %v540_v17 = vld [vmem:[%s1425_s4] sm:$0xff]  ;;  %v348_v18 = vld [vmem:[%s1221_s18 + $0x30] sm:$0xff]  ;;  %v349_v19 = vld [vmem:[%s1221_s18 + $0x38] sm:$0xff] }
  0x1e   : > { %1000 = vmatprep.subr.msk.bf16.mxu0 %vm1237_vm2, %v998_v8  ;;  %v541_v20 = vld [vmem:[%s1425_s4 + $0x8] sm:$0xff]  ;;  %v1010_v21 = vpack.c.bf16 %v349_v19, %v348_v18  ;;  %v542_v22 = vld [vmem:[%s1425_s4 + $0x10] sm:$0xff]  ;;  %v543_v23 = vld [vmem:[%s1425_s4 + $0x18] sm:$0xff] }
  0x1f   : > { %v350_v24 = vld [vmem:[%s1221_s18 + $0x40] sm:$0xff]  ;;  %v351_v25 = vld [vmem:[%s1221_s18 + $0x48] sm:$0xff]  ;;  %v352_v27 = vld [vmem:[%s1221_s18 + $0x50] sm:$0xff] }
  0x20   : > { %383 = vperm.xlu1 %1091, %v365_v16   ;;  %v1016_v26 = vpack.c.bf16 %v351_v25, %v350_v24  ;;  %v353_v28 = vld [vmem:[%s1221_s18 + $0x58] sm:$0xff]  ;;  %v354_v30 = vld [vmem:[%s1221_s18 + $0x60] sm:$0xff]  ;;  %v355_v31 = vld [vmem:[%s1221_s18 + $0x68] sm:$0xff] }
  0x21   : > { %373 = vperm.xlu0 %1090, %v363_v15   ;;  %v1022_v29 = vpack.c.bf16 %v353_v28, %v352_v27  ;;  %v1028_v32 = vpack.c.bf16 %v355_v31, %v354_v30  ;;  %v356_v33 = vld [vmem:[%s1221_s18 + $0x70] sm:$0xff]  ;;  %v357_v34 = vld [vmem:[%s1221_s18 + $0x78] sm:$0xff]  ;;  %v359_v36 = vld [vmem:[%s1422_s1 + $0x8] sm:$0xff] }
  0x22   : > { %v1034_v35 = vpack.c.bf16 %v357_v34, %v356_v33  ;;  %v360_v37 = vld [vmem:[%s1422_s1 + $0x10] sm:$0xff]  ;;  %v361_v38 = vld [vmem:[%s1422_s1 + $0x18] sm:$0xff]  ;;  %v536_v39 = vld [vmem:[%s1424_s3] sm:$0xff] }
  0x23   : > { %986 = vmatprep.mubr.msk.f32.mxu1 %vm564_vm3, %v536_v39  ;;  %v537_v58 = vld [vmem:[%s1424_s3 + $0x8] sm:$0xff]  ;;  %v538_v59 = vld [vmem:[%s1424_s3 + $0x10] sm:$0xff]  ;;  %v539_v60 = vld [vmem:[%s1424_s3 + $0x18] sm:$0xff] }
  0x24   : > { %551 = vperm.xlu1 %1091, %v541_v20   ;;  %v668_v13 = vld [vmem:[%s1211_s11 + $0x10] sm:$0xff] (!%p905_p9)  ;;  %v669_v19 = vld [vmem:[%s1211_s11 + $0x18] sm:$0xff] (!%p905_p9)  ;;  %v667_v20 = vld [vmem:[%s1211_s11 + $0x8] sm:$0xff] (!%p905_p9) }
  0x25   : > { %1003 = vmatpush3.bf16.xpose.msk.msra.mxu0 %vm1237_vm2, %v998_v8  ;;  %546 = vperm.xlu0 %1090, %v540_v17   ;;  %v688_v25 = vld [vmem:[%s1216_s14 + $0x8] sm:$0xff] (!%p905_p9)  ;;  %v690_v31 = vld [vmem:[%s1216_s14 + $0x18] sm:$0xff] (!%p905_p9) }
  0x26   : > { %1006 = vmatprep.subr.msk.bf16.mxu0 %vm1237_vm2, %v1004_v14 }
  0x28   : > { %561 = vperm.xlu1 %1091, %v543_v23  }
  0x29   : > { %556 = vperm.xlu0 %1090, %v542_v22  }
  0x2d   : > { %1009 = vmatpush3.bf16.xpose.msk.msra.mxu0 %vm1237_vm2, %v1004_v14  ;;  %v666_v14 = vld [vmem:[%s1211_s11] sm:$0xff] (!%p905_p9) }
  0x2e   : > { %1012 = vmatprep.subr.msk.bf16.mxu0 %vm1237_vm2, %v1010_v21 }
  0x35   : > { %1015 = vmatpush3.bf16.xpose.msk.msra.mxu0 %vm1237_vm2, %v1010_v21 }
  0x36   : > { %1018 = vmatprep.subr.msk.bf16.mxu0 %vm1237_vm2, %v1016_v26 }
  0x3d   : > { %1021 = vmatpush3.bf16.xpose.msk.msra.mxu0 %vm1237_vm2, %v1016_v26  ;;  %v687_v26 = vld [vmem:[%s1216_s14] sm:$0xff] (!%p905_p9) }
  0x3e   : > { %1024 = vmatprep.subr.msk.bf16.mxu0 %vm1237_vm2, %v1022_v29 }
  0x45   : > { %1027 = vmatpush3.bf16.xpose.msk.msra.mxu0 %vm1237_vm2, %v1022_v29 }
  0x46   : > { %1030 = vmatprep.subr.msk.bf16.mxu0 %vm1237_vm2, %v1028_v32 }
  0x4d   : > { %1033 = vmatpush3.bf16.xpose.msk.msra.mxu0 %vm1237_vm2, %v1028_v32  ;;  %v689_v32 = vld [vmem:[%s1216_s14 + $0x10] sm:$0xff] (!%p905_p9) }
  0x4e   : > { %1036 = vmatprep.subr.msk.bf16.mxu0 %vm1237_vm2, %v1034_v35 }
  0x55   : > { %1039 = vmatpush3.bf16.xpose.msk.msra.mxu0 %vm1237_vm2, %v1034_v35 }
  0x5c   : > { %973 = vmatmul.mubr.msk.f32.vlgmr.msra.gmra.mrb[0].mxu0 %vm386_vm1, %v359_v36 }
  0x5d   : > { %975 = vmatprep.mubr.msk.f32.mxu0 %vm386_vm1, %v360_v37 }
  0x60   : > { %976 = vmatmul.mubr.msk.f32.gmra.mrb[2].mxu0 %vm386_vm1, %v361_v38 }
  0x9b   : > { %v379_v41 = vpop.permute.xlu1 %378 }
  0x9c   : > { %v369_v40 = vpop.permute.xlu0 %368 }
  0x9f   : > { %v384_v48 = vpop.permute.xlu1 %383 }
  0xa0   : > { %v374_v42 = vpop.permute.xlu0 %373 }
  0xa3   : > { %v552_v61 = vpop.permute.xlu1 %551 }
  0xa4   : > { %v547_v62 = vpop.permute.xlu0 %546 }
  0xa7   : > { %v562_v3 = vpop.permute.xlu1 %561 }
  0xa8   : > { %v557_v5 = vpop.permute.xlu0 %556 }
 0x12f   : > { %v974_v43 = vpop.f32.mrb[0].mxu0 }
 0x130   : > { %v519_v44 = vadd.f32 %v974_v43, %v374_v42  ;;  %v513_v45 = vpop.f32.mrb[1].mxu0 }
 0x131   : > { %v514_v46 = vadd.f32 %v513_v45, %v369_v40 }
 0x132   : > { %v533_v47 = vmax.f32 %v519_v44, 0.0 }
 0x133   : > { %v532_v49 = vmax.f32 %v514_v46, 0.0  ;;  %v977_v50 = vpop.f32.mrb[2].mxu0 }
 0x134   : > { %v529_v51 = vadd.f32 %v977_v50, %v384_v48  ;;  %v523_v52 = vpop.f32.mrb[3].mxu0 }
 0x135   : > { %v524_v53 = vadd.f32 %v523_v52, %v379_v41  ;;  %v1040_v54 = vpack.c.bf16 %v533_v47, %v532_v49 }
 0x136   : > { %v535_v55 = vmax.f32 %v529_v51, 0.0 }
 0x137   : > { %v534_v56 = vmax.f32 %v524_v53, 0.0  ;;  %1041 = vmatprep.subr.bf16.mxu1 %v1040_v54 }
 0x138   : > { %1043 = vmatpush3.bf16.msra.mxu1 %v1040_v54 }
 0x139   : > { %v1044_v57 = vpack.c.bf16 %v535_v55, %v534_v56 }
 0x13b   : > { %1045 = vmatprep.subr.bf16.mxu1 %v1044_v57 }
 0x13c   : > { %1047 = vmatpush3.bf16.msra.mxu1 %v1044_v57 }
 0x13f   : > { %987 = vmatmul.mubr.msk.f32.vlgmr.msra.gmra.mrb[0].mxu1 %vm564_vm3, %v537_v58 }
 0x140   : > { %989 = vmatprep.mubr.msk.f32.mxu1 %vm564_vm3, %v538_v59 }
 0x143   : > { %990 = vmatmul.mubr.msk.f32.gmra.mrb[2].mxu1 %vm564_vm3, %v539_v60 }
 0x212   : > { %v988_v63 = vpop.f32.mrb[0].mxu1  ;;  %665 = sbr.rel (%p905_p9) target bundleno = 695 (0x2b7), region = 48 }
 0x213   : > { %v1342_v0 = vadd.f32 %v988_v63, %v552_v61  ;;  %v643_v1 = vpop.f32.mrb[1].mxu1 }
 0x214   : > { %v1344_v2 = vadd.f32 %v643_v1, %v547_v62 }
 0x215   : > { %v692_v9 = vmul.f32 (!%p905_p9), %v1342_v0, %v1342_v0 }
 0x216   : > { %v991_v4 = vpop.f32.mrb[2].mxu1  ;;  %670 = vadd.xlane.f32.xlu0 (!%p905_p9), %v1344_v2  ;;  %v691_v10 = vmul.f32 (!%p905_p9), %v1344_v2, %v1344_v2 }
 0x217   : > { %v659_v6 = vadd.f32 %v991_v4, %v562_v3  ;;  %v653_v7 = vpop.f32.mrb[3].mxu1 }
 0x218   : > { %v654_v8 = vadd.f32 %v653_v7, %v557_v5 }
 0x219   : > { %v694_v11 = vmul.f32 %v659_v6, %v659_v6 }
 0x21a   : > { %674 = vadd.xlane.f32.xlu1 %v654_v8  ;;  %672 = vadd.xlane.f32.xlu0 %v1342_v0  ;;  %v693_v12 = vmul.f32 %v654_v8, %v654_v8 }
 0x21e   : > { %676 = vadd.xlane.f32.xlu1 %v659_v6  ;;  %695 = vadd.xlane.f32.xlu0 %v691_v10 }
 0x222   : > { %697 = vadd.xlane.f32.xlu1 %v692_v9  ;;  %699 = vadd.xlane.f32.xlu0 %v693_v12 }
 0x226   : > { %701 = vadd.xlane.f32.xlu1 %v694_v11 }
 0x2a3   : > { %v671_v16 = vpop.xlane.xlu0 %670 }
 0x2a4   : > { %v678_v18 = vadd.f32 %v671_v16, %v666_v14 }
 0x2a6   : > { %683 = vst.msk [vmem:[%s1211_s11] sm:$0xff] %vm682_vm4, %v678_v18 }
 0x2a7   : > { %v675_v15 = vpop.xlane.xlu1 %674  ;;  %v673_v22 = vpop.xlane.xlu0 %672 }
 0x2a8   : > { %v680_v17 = vadd.f32 %v675_v15, %v668_v13  ;;  %v679_v24 = vadd.f32 %v673_v22, %v667_v20 }
 0x2aa   : > { %685 = vst.msk [vmem:[%s1211_s11 + $0x10] sm:$0xff] %vm682_vm4, %v680_v17  ;;  %684 = vst.msk [vmem:[%s1211_s11 + $0x8] sm:$0xff] %vm682_vm4, %v679_v24 }
 0x2ab   : > { %v677_v21 = vpop.xlane.xlu1 %676  ;;  %v696_v28 = vpop.xlane.xlu0 %695 }
 0x2ac   : > { %v681_v23 = vadd.f32 %v677_v21, %v669_v19  ;;  %v703_v30 = vadd.f32 %v696_v28, %v687_v26 }
 0x2ae   : > { %686 = vst.msk [vmem:[%s1211_s11 + $0x18] sm:$0xff] %vm682_vm4, %v681_v23  ;;  %707 = vst.msk [vmem:[%s1216_s14] sm:$0xff] %vm682_vm4, %v703_v30 }
 0x2af   : > { %v698_v27 = vpop.xlane.xlu1 %697  ;;  %v700_v34 = vpop.xlane.xlu0 %699 }
 0x2b0   : > { %v704_v29 = vadd.f32 %v698_v27, %v688_v25  ;;  %v705_v36 = vadd.f32 %v700_v34, %v689_v32 }
 0x2b2   : > { %708 = vst.msk [vmem:[%s1216_s14 + $0x8] sm:$0xff] %vm682_vm4, %v704_v29  ;;  %709 = vst.msk [vmem:[%s1216_s14 + $0x10] sm:$0xff] %vm682_vm4, %v705_v36 }
 0x2b3   : > { %v702_v33 = vpop.xlane.xlu1 %701 }
 0x2b4   : > { %v706_v35 = vadd.f32 %v702_v33, %v690_v31 }
 0x2b6   : > { %710 = vst.msk [vmem:[%s1216_s14 + $0x18] sm:$0xff] %vm682_vm4, %v706_v35 }
 0x2b7 PF: > { %714 = sbr.rel (%p297_p6) target bundleno = 860 (0x35c), region = 52  ;;  %v715_v37 = vlaneseq (!%p297_p6)  ;;  %s907_s20 = sshll.u32 (!%p297_p6), %s1202_s29, 7  ;;  %v727_v49 = vld [vmem:[%s1211_s11 + $0x10] sm:$0xff] (!%p297_p6)  ;;  %v725_v50 = vld [vmem:[%s1211_s11] sm:$0xff] (!%p297_p6)  ;;  %vm741_vm6 = vcmask (!%p297_p6), 7168   ;;  %v728_v55 = vld [vmem:[%s1211_s11 + $0x18] sm:$0xff] (!%p297_p6) }
 0x2b8   : > { %v718_v38 = vstv (!%p297_p6), %s907_s20  ;;  %v726_v56 = vld [vmem:[%s1211_s11 + $0x8] sm:$0xff] (!%p297_p6)  ;;  %v746_v62 = vld [vmem:[%s1216_s14] sm:$0xff] (!%p297_p6) }
 0x2b9   : > { %v716_v39 = vand.u32 (!%p297_p6), 127, %v715_v37  ;;  %v747_v61 = vld [vmem:[%s1216_s14 + $0x8] sm:$0xff] (!%p297_p6)  ;;  %v748_v4 = vld [vmem:[%s1216_s14 + $0x10] sm:$0xff] (!%p297_p6) }
 0x2bb   : > { %v719_v40 = vadd.s32 (!%p297_p6), %v718_v38, %v716_v39 }
 0x2bd   : > { %vm720_vm5 = vcmp.lt.s32.totalorder (!%p297_p6), %v719_v40, 600  ;;  %v749_v3 = vld [vmem:[%s1216_s14 + $0x18] sm:$0xff] (!%p297_p6) }
 0x2be   : > { %v723_v41 = vsel %vm720_vm5, %v654_v8, 0.0  ;;  %v721_v42 = vsel %vm720_vm5, %v1344_v2, 0.0  ;;  %v724_v43 = vsel %vm720_vm5, %v659_v6, 0.0  ;;  %v722_v44 = vsel %vm720_vm5, %v1342_v0, 0.0 }
 0x2bf   : > { %733 = vadd.xlane.f32.xlu1 %v723_v41  ;;  %729 = vadd.xlane.f32.xlu0 %v721_v42  ;;  %v751_v45 = vmul.f32 %v722_v44, %v722_v44  ;;  %v750_v46 = vmul.f32 %v721_v42, %v721_v42  ;;  %v753_v47 = vmul.f32 %v724_v43, %v724_v43 }
 0x2c0   : > { %v752_v48 = vmul.f32 %v723_v41, %v723_v41 }
 0x2c3   : > { %735 = vadd.xlane.f32.xlu1 %v724_v43  ;;  %731 = vadd.xlane.f32.xlu0 %v722_v44 }
 0x2c7   : > { %756 = vadd.xlane.f32.xlu1 %v751_v45  ;;  %754 = vadd.xlane.f32.xlu0 %v750_v46 }
 0x2cb   : > { %760 = vadd.xlane.f32.xlu1 %v753_v47  ;;  %758 = vadd.xlane.f32.xlu0 %v752_v48 }
 0x34c   : > { %v734_v51 = vpop.xlane.xlu1 %733  ;;  %v730_v52 = vpop.xlane.xlu0 %729 }
 0x34d   : > { %v739_v53 = vadd.f32 %v734_v51, %v727_v49  ;;  %v737_v54 = vadd.f32 %v730_v52, %v725_v50 }
 0x34f   : > { %744 = vst.msk [vmem:[%s1211_s11 + $0x10] sm:$0xff] %vm741_vm6, %v739_v53  ;;  %742 = vst.msk [vmem:[%s1211_s11] sm:$0xff] %vm741_vm6, %v737_v54 }
 0x350   : > { %v736_v57 = vpop.xlane.xlu1 %735  ;;  %v732_v58 = vpop.xlane.xlu0 %731 }
 0x351   : > { %v740_v59 = vadd.f32 %v736_v57, %v728_v55  ;;  %v738_v60 = vadd.f32 %v732_v58, %v726_v56 }
 0x353   : > { %745 = vst.msk [vmem:[%s1211_s11 + $0x18] sm:$0xff] %vm741_vm6, %v740_v59  ;;  %743 = vst.msk [vmem:[%s1211_s11 + $0x8] sm:$0xff] %vm741_vm6, %v738_v60 }
 0x354   : > { %v757_v63 = vpop.xlane.xlu1 %756  ;;  %v755_v0 = vpop.xlane.xlu0 %754 }
 0x355   : > { %v763_v1 = vadd.f32 %v757_v63, %v747_v61  ;;  %v762_v2 = vadd.f32 %v755_v0, %v746_v62 }
 0x357   : > { %767 = vst.msk [vmem:[%s1216_s14 + $0x8] sm:$0xff] %vm741_vm6, %v763_v1  ;;  %766 = vst.msk [vmem:[%s1216_s14] sm:$0xff] %vm741_vm6, %v762_v2 }
 0x358   : > { %v761_v5 = vpop.xlane.xlu1 %760  ;;  %v759_v6 = vpop.xlane.xlu0 %758 }
 0x359   : > { %v765_v7 = vadd.f32 %v761_v5, %v749_v3  ;;  %v764_v8 = vadd.f32 %v759_v6, %v748_v4 }
 0x35b   : > { %769 = vst.msk [vmem:[%s1216_s14 + $0x18] sm:$0xff] %vm741_vm6, %v765_v7  ;;  %768 = vst.msk [vmem:[%s1216_s14 + $0x10] sm:$0xff] %vm741_vm6, %v764_v8 }
 0x35c PF: > { %s17_s25 = sadd.s32 1, %s1130_s25   ;;  %s1430_s21 = smov %s1122_s23 }
 0x35d   : > { %p14_p10 = scmp.ge.s32.totalorder %s17_s25, 8   ;;  %s1431_s22 = smov %s1126_s24 }
 0x35e   : > { %s1432_s23 = smov %s1435_s26  ;;  %s1433_s24 = smov %s1439_s27 }
 0x35f   :  { %16 = sbr.rel (!%p14_p10) target bundleno = 3 (0x3), region = 94 }

// kernel: fully_connected.3
= control target key start
LH: loop header
LB: loop body
LE: loop exit
PB: predicated region body
PF: predicated region fallthrough
CT: control target
= control target key end

     0   :  { %16 = vsyncpa [#allocation3], 0  ;;  %s1693_s0 = inlined_call_operand.vmem [shape: f32[600,4], index: 0, kind: input, shape index: {}]   ;;  %s1694_s1 = inlined_call_operand.vmem [shape: f32[32,4], index: 1, kind: input, shape index: {}]   ;;  %s1695_s2 = inlined_call_operand.vmem [shape: f32[32,1], index: 2, kind: input, shape index: {}]   ;;  %s1696_s3 = inlined_call_operand.vmem [shape: f32[32,32], index: 3, kind: input, shape index: {}]   ;;  %s1697_s4 = inlined_call_operand.vmem [shape: f32[32,1], index: 4, kind: input, shape index: {}]   ;;  %s1698_s5 = inlined_call_operand.vmem [shape: f32[32,1], index: 5, kind: input, shape index: {}]   ;;  %s1699_s6 = inlined_call_operand.vmem [shape: f32[32,1], index: 6, kind: input, shape index: {}]   ;;  %s1700_s7 = inlined_call_operand.vmem [shape: f32[2,32], index: 7, kind: input, shape index: {}]   ;;  %s1701_s8 = inlined_call_operand.vmem [shape: f32[2,1], index: 8, kind: input, shape index: {}]   ;;  %s1702_s9 = inlined_call_operand.vmem [shape: f32[2,32,1], index: 9, kind: input, shape index: {}]   ;;  %s1703_s10 = inlined_call_operand.vmem [shape: f32[2,32,1], index: 10, kind: input, shape index: {}]   ;;  %s1704_s11 = inlined_call_operand.hbm [shape: f32[2,600], index: 11, kind: output, shape index: {}]  }
   0x1   :  { %18 = vsyncpa [#allocation3 + $0x1], 0  ;;  %s1393_s17 = smov 0   ;;  %s1395_s18 = smov 0  }
   0x2   :  { %s1397_s19 = smov 0   ;;  %s1399_s20 = smov 0  }
   0x3 LB: > { %1706 = sst [smem:[#allocation5_spill]] %s1322_s19  ;;  %s1414_s21 = sadd.s32 4294967295, %s1326_s20   ;;  %s1326_s20 = sphi %s1399_s20, %s1716_s20   ;;  %s1322_s19 = sphi %s1397_s19, %s1713_s19   ;;  %s1318_s18 = sphi %s1395_s18, %s1715_s18   ;;  %s1314_s17 = sphi %s1393_s17, %s1714_s17  }
   0x4   : > { %s1012_s22 = sadd.s32 4294967294, %s1326_s20   ;;  %s1418_s23 = sadd.s32 1, %s1326_s20  }
   0x5   : > { %s267_s24 = sadd.s32 1, %s1322_s19  ;;  %s264_s25 = ssub.s32 %s1326_s20, %s1418_s23 }
   0x6   : > { %p277_p0 = scmp.ne.s32.totalorder %s1322_s19, %s1318_s18  ;;  %p265_p1 = scmp.eq.s32.totalorder %s264_s25, 0 }
   0x7   : > { %p278_p2 = scmp.eq.s32.totalorder %s1414_s21, 4  ;;  %p283_p3 = scmp.ne.s32.totalorder %s1318_s18, %s1314_s17 }
   0x8   : > { %p284_p4 = scmp.eq.s32.totalorder %s1012_s22, 4  ;;  %p1015_p7 = scmp.ge.s32.totalorder %s1326_s20, 1 }
   0x9   : > { %s1429_s26 = scalar_select %p265_p1, %s1322_s19, %s267_s24  }
   0xa   : > { %p1431_p5 = por %p278_p2, %p277_p0  ;;  %p1435_p6 = por %p284_p4, %p283_p3 }
   0xb   : > { %1707 = sst [smem:[#allocation6_spill]] %s1429_s26  ;;  %p349_p8 = scmp.lt.s32.totalorder %s1326_s20, 6 }
   0xd   : > { %p350_p9 = pnand %p1015_p7, %p349_p8 }
   0xe   : > { %s1017_s29 = sshll.u32 (!%p350_p9), %s1414_s21, 4  ;;  %vm523_vm0 = vcmask (!%p350_p9), 31744   ;;  %v495_v0 = vld [vmem:[%s1694_s1] sm:$0xff] (!%p350_p9)  ;;  %v1328_v1 = vmov (!%p350_p9), 0   ;;  %v501_v3 = vld [vmem:[%s1695_s2 + $0x10] sm:$0xff] (!%p350_p9)  ;;  %v500_v4 = vld [vmem:[%s1695_s2 + $0x8] sm:$0xff] (!%p350_p9) }
   0xf   : > { %353 = sbr.rel (%p350_p9) target bundleno = 805 (0x325), region = 64  ;;  %p398_p10 = scmp.lt.s32.totalorder (!%p350_p9), %s1017_s29, 74  ;;  %1114 = vmatprep.mubr.msk.f32.mxu0 (!%p350_p9), %vm523_vm0, %v495_v0  ;;  %1250 = vset.pattern.permute.xlu0 (!%p350_p9), %v1328_v1  ;;  %v499_v2 = vld [vmem:[%s1695_s2] sm:$0xff] (!%p350_p9)  ;;  %v502_v5 = vld [vmem:[%s1695_s2 + $0x18] sm:$0xff] (!%p350_p9)  ;;  %vm1469_vm1 = vmpackc.low (!%p350_p9), %vm523_vm0, %vm523_vm0  ;;  %vm701_vm2 = vcmask (!%p350_p9), 261120   ;;  %vm1330_vm3 = vmmov (!%p350_p9), 0  }
  0x10   : > { %505 = vperm.xlu0 (!%p350_p9), %1250, %v499_v2   ;;  %1251 = vset.pattern.permute.xlu1 (!%p350_p9), %v1328_v1  ;;  %v407_v6 = vld [vmem:[%s1702_s9] sm:$0xff] (!%p350_p9)  ;;  %v409_v14 = vld [vmem:[%s1702_s9 + $0x10] sm:$0xff] (!%p350_p9)  ;;  %v678_v23 = vld [vmem:[%s1697_s4 + $0x8] sm:$0xff] (!%p350_p9) }
  0x11   : > { %515 = vperm.xlu1 (!%p350_p9), %1251, %v501_v3   ;;  %v411_v7 = vld [vmem:[%s1702_s9 + $0x20] sm:$0xff] (!%p350_p9)  ;;  %v413_v15 = vld [vmem:[%s1702_s9 + $0x30] sm:$0xff] (!%p350_p9)  ;;  %v680_v31 = vld [vmem:[%s1697_s4 + $0x18] sm:$0xff] (!%p350_p9) }
  0x12   : > { %v415_v8 = vld [vmem:[%s1703_s10] sm:$0xff] (!%p350_p9)  ;;  %v423_v11 = vadd.f32 (!%p350_p9), %v411_v7, %v407_v6  ;;  %v425_v20 = vadd.f32 (!%p350_p9), %v413_v15, %v409_v14  ;;  %v417_v28 = vld [vmem:[%s1703_s10 + $0x10] sm:$0xff] (!%p350_p9)  ;;  %v408_v38 = vld [vmem:[%s1702_s9 + $0x8] sm:$0xff] (!%p350_p9) }
  0x13   : > { %v419_v10 = vld [vmem:[%s1703_s10 + $0x20] sm:$0xff] (!%p350_p9)  ;;  %v679_v29 = vld [vmem:[%s1697_s4 + $0x10] sm:$0xff] (!%p350_p9)  ;;  %v412_v39 = vld [vmem:[%s1702_s9 + $0x28] sm:$0xff] (!%p350_p9) }
  0x14   : > { %510 = vperm.xlu0 (!%p350_p9), %1250, %v500_v4   ;;  %v677_v12 = vld [vmem:[%s1697_s4] sm:$0xff] (!%p350_p9)  ;;  %v431_v13 = vadd.f32 (!%p350_p9), %v419_v10, %v415_v8  ;;  %v1493_v19 = vmul.f32 (!%p350_p9), 0.0016666667, %v423_v11  ;;  %v1501_v27 = vmul.f32 (!%p350_p9), 0.0016666667, %v425_v20  ;;  %v421_v34 = vld [vmem:[%s1703_s10 + $0x30] sm:$0xff] (!%p350_p9)  ;;  %v424_v42 = vadd.f32 (!%p350_p9), %v412_v39, %v408_v38 }
  0x15   : > { %520 = vperm.xlu1 (!%p350_p9), %1251, %v502_v5   ;;  %v433_v36 = vadd.f32 (!%p350_p9), %v421_v34, %v417_v28  ;;  %v416_v40 = vld [vmem:[%s1703_s10 + $0x8] sm:$0xff] (!%p350_p9)  ;;  %v410_v46 = vld [vmem:[%s1702_s9 + $0x18] sm:$0xff] (!%p350_p9)  ;;  %v451_v6 = vld [vmem:[%s1698_s5] sm:$0xff] (!%p350_p9) }
  0x16   : > { %s1718_s29 = smov (!%p398_p10, %s1017_s29), 74  ;;  %v435_v24 = vmul.f32 0.0016666667, %v431_v13  ;;  %v439_v26 = vmul.f32 %v1493_v19, %v1493_v19  ;;  %v441_v37 = vmul.f32 %v1501_v27, %v1501_v27  ;;  %v420_v41 = vld [vmem:[%s1703_s10 + $0x28] sm:$0xff]  ;;  %v414_v47 = vld [vmem:[%s1702_s9 + $0x38] sm:$0xff]  ;;  %v453_v13 = vld [vmem:[%s1698_s5 + $0x10] sm:$0xff] }
  0x17   : > { %s1018_s19 = sshll.u32 %s1718_s29, 3  ;;  %v437_v44 = vmul.f32 0.0016666667, %v433_v36  ;;  %v432_v45 = vadd.f32 %v420_v41, %v416_v40  ;;  %v428_v49 = vmul.f32 0.0016666667, %v424_v42  ;;  %v418_v50 = vld [vmem:[%s1703_s10 + $0x18] sm:$0xff]  ;;  %v426_v52 = vadd.f32 %v414_v47, %v410_v46 }
  0x18   : > { %s1479_s30 = scalar_lea.vmem %s1693_s0, %s1018_s19  ;;  %683 = vperm.xlu0 %1250, %v677_v12   ;;  %v443_v30 = vsub.f32 %v435_v24, %v439_v26  ;;  %v422_v51 = vld [vmem:[%s1703_s10 + $0x38] sm:$0xff]  ;;  %v452_v20 = vld [vmem:[%s1698_s5 + $0x8] sm:$0xff]  ;;  %v469_v28 = vld [vmem:[%s1699_s6 + $0x10] sm:$0xff]  ;;  %s1046_s29 = sshll.u32 %s1414_s21, 5 }
  0x19   : > { %v479_v16 = vld [vmem:[%s1479_s30] sm:$0xff]  ;;  %v480_v17 = vld [vmem:[%s1479_s30 + $0x8] sm:$0xff]  ;;  %v481_v18 = vld [vmem:[%s1479_s30 + $0x10] sm:$0xff]  ;;  %688 = vperm.xlu1 %1251, %v678_v23   ;;  %v445_v53 = vsub.f32 %v437_v44, %v441_v37  ;;  %v436_v54 = vmul.f32 0.0016666667, %v432_v45  ;;  %v434_v55 = vadd.f32 %v422_v51, %v418_v50  ;;  %v440_v56 = vmul.f32 %v428_v49, %v428_v49  ;;  %s1651_s16 = scalar_lea.hbm %s1704_s11, %s1046_s29  ;;  %s1332_s21 = smov [#allocation2]  }
  0x1a   : > { %v1145_v21 = vpack.c.bf16 %v480_v17, %v479_v16  ;;  %v482_v22 = vld [vmem:[%s1479_s30 + $0x18] sm:$0xff]  ;;  %v483_v32 = vld [vmem:[%s1479_s30 + $0x20] sm:$0xff]  ;;  %v484_v33 = vld [vmem:[%s1479_s30 + $0x28] sm:$0xff]  ;;  %v447_v35 = vmax.f32 %v443_v30, 0.0  ;;  %v430_v57 = vmul.f32 0.0016666667, %v426_v52 }
  0x1b   : > { %v1151_v25 = vpack.c.bf16 %v482_v22, %v481_v18  ;;  %v1157_v48 = vpack.c.bf16 %v484_v33, %v483_v32  ;;  %v449_v58 = vmax.f32 %v445_v53, 0.0  ;;  %v438_v59 = vmul.f32 0.0016666667, %v434_v55  ;;  %v485_v62 = vld [vmem:[%s1479_s30 + $0x30] sm:$0xff]  ;;  %v486_v63 = vld [vmem:[%s1479_s30 + $0x38] sm:$0xff]  ;;  %v487_v11 = vld [vmem:[%s1479_s30 + $0x40] sm:$0xff] }
  0x1c   : > { %1147 = vmatprep.subr.msk.bf16.mxu0 %vm1469_vm1, %v1145_v21  ;;  %693 = vperm.xlu0 %1250, %v679_v29   ;;  %v455_v43 = vadd.f32 1e-05, %v447_v35  ;;  %v444_v60 = vsub.f32 %v436_v54, %v440_v56  ;;  %v442_v61 = vmul.f32 %v430_v57, %v430_v57  ;;  %v1163_v3 = vpack.c.bf16 %v486_v63, %v485_v62  ;;  %v488_v12 = vld [vmem:[%s1479_s30 + $0x48] sm:$0xff]  ;;  %v467_v17 = vld [vmem:[%s1699_s6] sm:$0xff]  ;;  %v489_v24 = vld [vmem:[%s1479_s30 + $0x50] sm:$0xff]  ;;  %s1268_s24 = sshll.u32 %s1332_s21, 4  ;;  %s1269_s24 = int_to_ptr.vmem [resolvable:$false] %s1268_s24 }
  0x1d   : > { %1150 = vmatpush3.bf16.xpose.msk.msra.mxu0 %vm1469_vm1, %v1145_v21  ;;  %698 = vperm.xlu1 %1251, %v680_v31   ;;  %v457_v0 = vadd.f32 1e-05, %v449_v58  ;;  %v1169_v14 = vpack.c.bf16 %v488_v12, %v487_v11  ;;  %v470_v36 = vld [vmem:[%s1699_s6 + $0x18] sm:$0xff]  ;;  %v491_v37 = vld [vmem:[%s1479_s30 + $0x60] sm:$0xff]  ;;  %v492_v38 = vld [vmem:[%s1479_s30 + $0x68] sm:$0xff]  ;;  %s1270_s26 = scalar_lea.vmem %s1269_s24, 64 }
  0x1e   : > { %1153 = vmatprep.subr.msk.bf16.mxu0 %vm1469_vm1, %v1151_v25  ;;  %1252 = vrsqrt.f32 %v455_v43  ;;  %v448_v1 = vmax.f32 %v444_v60, 0.0  ;;  %v446_v2 = vsub.f32 %v438_v59, %v442_v61  ;;  %v852_v39 = vld [vmem:[%s1701_s8] sm:$0x3]  ;;  %v1181_v41 = vpack.c.bf16 %v492_v38, %v491_v37  ;;  %v493_v42 = vld [vmem:[%s1479_s30 + $0x70] sm:$0xff]  ;;  %v494_v43 = vld [vmem:[%s1479_s30 + $0x78] sm:$0xff] }
  0x1f   : > { %1254 = vrsqrt.f32 %v457_v0  ;;  %v1187_v44 = vpack.c.bf16 %v494_v43, %v493_v42  ;;  %v496_v45 = vld [vmem:[%s1694_s1 + $0x8] sm:$0xff]  ;;  %v497_v46 = vld [vmem:[%s1694_s1 + $0x10] sm:$0xff]  ;;  %v498_v47 = vld [vmem:[%s1694_s1 + $0x18] sm:$0xff] }
  0x20   : > { %v456_v4 = vadd.f32 1e-05, %v448_v1  ;;  %v450_v5 = vmax.f32 %v446_v2, 0.0  ;;  %v673_v9 = vld [vmem:[%s1696_s3] sm:$0xff]  ;;  %v674_v2 = vld [vmem:[%s1696_s3 + $0x8] sm:$0xff] }
  0x21   : > { %1128 = vmatprep.mubr.msk.f32.mxu1 %vm701_vm2, %v673_v9  ;;  %v851_v42 = vld [vmem:[%s1700_s7] sm:$0x3] }
  0x22   : > { %1256 = vrsqrt.f32 %v456_v4  ;;  %v458_v7 = vadd.f32 1e-05, %v450_v5  ;;  %v676_v4 = vld [vmem:[%s1696_s3 + $0x18] sm:$0xff]  ;;  %v1329_v5 = vmov 0.0|0.0  }
  0x24   : > { %1258 = vrsqrt.f32 %v458_v7 }
  0x25   : > { %1156 = vmatpush3.bf16.xpose.msk.msra.mxu0 %vm1469_vm1, %v1151_v25  ;;  %v490_v25 = vld [vmem:[%s1479_s30 + $0x58] sm:$0xff]  ;;  %s390_s30 = sand.u32 1, %s1318_s18  }
  0x26   : > { %1159 = vmatprep.subr.msk.bf16.mxu0 %vm1469_vm1, %v1157_v48  ;;  %v1175_v32 = vpack.c.bf16 %v490_v25, %v489_v24  ;;  %s1016_s25 = sshll.u32 %s390_s30, 1  ;;  %s940_s19 = scalar_lea.sflag [#allocation3], %s390_s30 }
  0x27   : > { %s392_s12 = scalar_lea.vmem [#allocation2], %s1016_s25 }
  0x28   : > { %v1253_v8 = vpop.eup %1252  ;;  %s953_s13 = sshll.u32 %s392_s12, 4  ;;  %s1653_s13 = int_to_ptr.vmem [resolvable:$true] %s953_s13 }
  0x29   : > { %v463_v10 = vmul.f32 %v1253_v8, %v451_v6  ;;  %v1255_v16 = vpop.eup %1254  ;;  %v1331_v6 = vmov 0.0   ;;  %s1264_s22 = scalar_lea.vmem %s1653_s13, 32  ;;  %p1271_p0 = scmp.lt.s32.totalorder %s1653_s13, %s1269_s24 }
  0x2a   : > { %v465_v18 = vmul.f32 %v1255_v16, %v453_v13  ;;  %p1265_p11 = scmp.ne.s32.totalorder %s1653_s13, %s1264_s22  ;;  %p1272_p1 = scmp.lt.s32.totalorder %s1270_s26, %s1264_s22 }
  0x2b   : > { %801 = vperm.xlu0 %1250, %v463_v10   ;;  %v471_v15 = vmul.f32 %v463_v10, %v1493_v19  ;;  %v454_v19 = vld [vmem:[%s1698_s5 + $0x18] sm:$0xff] }
  0x2c   : > { %v1257_v21 = vpop.eup %1256  ;;  %v473_v23 = vmul.f32 %v465_v18, %v1501_v27  ;;  %v468_v27 = vld [vmem:[%s1699_s6 + $0x8] sm:$0xff]  ;;  %p1266_p12 = pnand %p1265_p11, %p1431_p5  ;;  %p1273_p2 = por %p1272_p1, %p1271_p0 }
  0x2d   : > { %1162 = vmatpush3.bf16.xpose.msk.msra.mxu0 %vm1469_vm1, %v1157_v48  ;;  %v475_v22 = vsub.f32 %v467_v17, %v471_v15  ;;  %v464_v26 = vmul.f32 %v1257_v21, %v452_v20 }
  0x2e   : > { %1165 = vmatprep.subr.msk.bf16.mxu0 %vm1469_vm1, %v1163_v3  ;;  %v1259_v29 = vpop.eup %1258  ;;  %v477_v33 = vsub.f32 %v469_v28, %v473_v23  ;;  %p1267_p13 = pneg %p1266_p12 }
  0x2f   : > { %811 = vperm.xlu0 %1250, %v465_v18   ;;  %806 = vperm.xlu1 %1251, %v464_v26   ;;  %v466_v30 = vmul.f32 %v1259_v29, %v454_v19  ;;  %v472_v31 = vmul.f32 %v464_v26, %v428_v49 }
  0x30   : > { %p1274_p3 = pnand %p1273_p2, %p1267_p13 }
  0x31   : > { %v476_v34 = vsub.f32 %v468_v27, %v472_v31  ;;  %v474_v35 = vmul.f32 %v466_v30, %v430_v57 }
  0x33   : > { %825 = vperm.xlu0 %1250, %v475_v22   ;;  %816 = vperm.xlu1 %1251, %v466_v30   ;;  %v478_v40 = vsub.f32 %v470_v36, %v474_v35 }
  0x35   : > { %1168 = vmatpush3.bf16.xpose.msk.msra.mxu0 %vm1469_vm1, %v1163_v3  ;;  %v675_v3 = vld [vmem:[%s1696_s3 + $0x10] sm:$0xff] }
  0x36   : > { %1171 = vmatprep.subr.msk.bf16.mxu0 %vm1469_vm1, %v1169_v14 }
  0x37   : > { %835 = vperm.xlu0 %1250, %v477_v33   ;;  %830 = vperm.xlu1 %1251, %v476_v34  }
  0x3b   : > { %855 = vperm.xlu0 %1250, %v852_v39   ;;  %840 = vperm.xlu1 %1251, %v478_v40  }
  0x3d   : > { %1174 = vmatpush3.bf16.xpose.msk.msra.mxu0 %vm1469_vm1, %v1169_v14 }
  0x3e   : > { %1177 = vmatprep.subr.msk.bf16.mxu0 %vm1469_vm1, %v1175_v32 }
  0x45   : > { %1180 = vmatpush3.bf16.xpose.msk.msra.mxu0 %vm1469_vm1, %v1175_v32 }
  0x46   : > { %1183 = vmatprep.subr.msk.bf16.mxu0 %vm1469_vm1, %v1181_v41 }
  0x4d   : > { %1186 = vmatpush3.bf16.xpose.msk.msra.mxu0 %vm1469_vm1, %v1181_v41 }
  0x4e   : > { %1189 = vmatprep.subr.msk.bf16.mxu0 %vm1469_vm1, %v1187_v44 }
  0x55   : > { %1192 = vmatpush3.bf16.xpose.msk.msra.mxu0 %vm1469_vm1, %v1187_v44 }
  0x5c   : > { %1115 = vmatmul.mubr.msk.f32.vlgmr.msra.gmra.mrb[0].mxu0 %vm523_vm0, %v496_v45 }
  0x5d   : > { %1117 = vmatprep.mubr.msk.f32.mxu0 %vm523_vm0, %v497_v46 }
  0x60   : > { %1118 = vmatmul.mubr.msk.f32.gmra.mrb[2].mxu0 %vm523_vm0, %v498_v47 }
  0x8f   : > { %v506_v48 = vpop.permute.xlu0 %505 }
  0x90   : > { %v516_v49 = vpop.permute.xlu1 %515 }
  0x93   : > { %v511_v50 = vpop.permute.xlu0 %510 }
  0x94   : > { %v521_v56 = vpop.permute.xlu1 %520 }
  0x97   : > { %v684_v8 = vpop.permute.xlu0 %683 }
  0x98   : > { %v689_v7 = vpop.permute.xlu1 %688 }
  0x9b   : > { %v694_v11 = vpop.permute.xlu0 %693 }
  0x9c   : > { %v699_v10 = vpop.permute.xlu1 %698 }
  0xaa   : > { %v802_v13 = vpop.permute.xlu0 %801 }
  0xae   : > { %v807_v12 = vpop.permute.xlu1 %806  ;;  %v812_v15 = vpop.permute.xlu0 %811 }
  0xb2   : > { %v817_v14 = vpop.permute.xlu1 %816  ;;  %v826_v22 = vpop.permute.xlu0 %825 }
  0xb6   : > { %v831_v20 = vpop.permute.xlu1 %830  ;;  %v836_v35 = vpop.permute.xlu0 %835 }
  0xba   : > { %v841_v33 = vpop.permute.xlu1 %840  ;;  %v856_v43 = vpop.permute.xlu0 %855 }
 0x12f   : > { %v1116_v51 = vpop.f32.mrb[0].mxu0 }
 0x130   : > { %v656_v52 = vadd.f32 %v1116_v51, %v511_v50  ;;  %v650_v53 = vpop.f32.mrb[1].mxu0 }
 0x131   : > { %v651_v54 = vadd.f32 %v650_v53, %v506_v48 }
 0x132   : > { %v670_v55 = vmax.f32 %v656_v52, 0.0 }
 0x133   : > { %v669_v57 = vmax.f32 %v651_v54, 0.0  ;;  %v1119_v58 = vpop.f32.mrb[2].mxu0 }
 0x134   : > { %v666_v59 = vadd.f32 %v1119_v58, %v521_v56  ;;  %v660_v60 = vpop.f32.mrb[3].mxu0 }
 0x135   : > { %v661_v61 = vadd.f32 %v660_v60, %v516_v49  ;;  %v1193_v62 = vpack.c.bf16 %v670_v55, %v669_v57 }
 0x136   : > { %v672_v63 = vmax.f32 %v666_v59, 0.0 }
 0x137   : > { %v671_v0 = vmax.f32 %v661_v61, 0.0  ;;  %1194 = vmatprep.subr.bf16.mxu1 %v1193_v62 }
 0x138   : > { %1196 = vmatpush3.bf16.msra.mxu1 %v1193_v62 }
 0x139   : > { %v1197_v1 = vpack.c.bf16 %v672_v63, %v671_v0 }
 0x13b   : > { %1198 = vmatprep.subr.bf16.mxu1 %v1197_v1 }
 0x13c   : > { %1200 = vmatpush3.bf16.msra.mxu1 %v1197_v1 }
 0x13d   : > { %1201 = vmatprep.subr.bf16.mxu1 %v1329_v5 }
 0x13f   : > { %1129 = vmatmul.mubr.msk.f32.vlgmr.msra.gmra.mrb[0].mxu1 %vm701_vm2, %v674_v2 }
 0x140   : > { %1131 = vmatprep.mubr.msk.f32.mxu1 %vm701_vm2, %v675_v3 }
 0x143   : > { %1132 = vmatmul.mubr.msk.f32.gmra.mrb[2].mxu1 %vm701_vm2, %v676_v4 }
 0x144   : > { %1142 = vmatprep.mubr.msk.f32.mxu1 %vm1330_vm3, %v1331_v6 }
 0x212   : > { %v1130_v16 = vpop.f32.mrb[0].mxu1 }
 0x213   : > { %v786_v17 = vadd.f32 %v1130_v16, %v689_v7  ;;  %v780_v18 = vpop.f32.mrb[1].mxu1 }
 0x214   : > { %v781_v21 = vadd.f32 %v780_v18, %v684_v8 }
 0x215   : > { %v820_v19 = vmul.f32 %v807_v12, %v786_v17 }
 0x216   : > { %v819_v23 = vmul.f32 %v802_v13, %v781_v21  ;;  %v1133_v24 = vpop.f32.mrb[2].mxu1 }
 0x217   : > { %v844_v25 = vadd.f32 %v831_v20, %v820_v19  ;;  %v796_v26 = vadd.f32 %v1133_v24, %v699_v10  ;;  %v790_v28 = vpop.f32.mrb[3].mxu1 }
 0x218   : > { %v843_v29 = vadd.f32 %v826_v22, %v819_v23  ;;  %v791_v30 = vadd.f32 %v790_v28, %v694_v11 }
 0x219   : > { %v848_v31 = vmax.f32 %v844_v25, 0.0  ;;  %v822_v32 = vmul.f32 %v817_v14, %v796_v26 }
 0x21a   : > { %v847_v27 = vmax.f32 %v843_v29, 0.0  ;;  %v821_v34 = vmul.f32 %v812_v15, %v791_v30 }
 0x21b   : > { %v846_v36 = vadd.f32 %v841_v33, %v822_v32 }
 0x21c   : > { %v1202_v37 = vpack.c.bf16 %v848_v31, %v847_v27  ;;  %v845_v38 = vadd.f32 %v836_v35, %v821_v34 }
 0x21d   : > { %v850_v39 = vmax.f32 %v846_v36, 0.0 }
 0x21e   : > { %v849_v40 = vmax.f32 %v845_v38, 0.0  ;;  %1203 = vmatpush3.bf16.msra.mxu1 %v1202_v37 }
 0x21f   : > { %1204 = vmatprep.subr.bf16.mxu1 %v1329_v5 }
 0x220   : > { %v1205_v41 = vpack.c.bf16 %v850_v39, %v849_v40 }
 0x222   : > { %1206 = vmatpush3.bf16.msra.mxu1 %v1205_v41 }
 0x225   : > { %1143 = vmatmul.mubr.msk.f32.vlgmr.msra.gmra.mrb[4].mxu1 %vm701_vm2, %v851_v42 }
 0x2f8   : > { %v927_v44 = vpop.f32.mrb[4].mxu1 }
 0x2f9   : > { %v928_v45 = vadd.f32 %v927_v44, %v856_v43  ;;  %v1144_v46 = vpop.f32.mrb[5].mxu1 }
 0x2fb   : > { %v1044_v47 = vmul.f32 -1.442695, %v928_v45 }
 0x2fd   : > { %1260 = vpow2.f32 %v1044_v47 }
 0x307   : > { %v1261_v9 = vpop.eup %1260 }
 0x308   : > { %v934_v48 = vadd.f32 1.0, %v1261_v9 }
 0x30a   : > { %1262 = vrcp.f32 %v934_v48 }
 0x314   : > { %v1263_v49 = vpop.eup %1262 }
 0x315   : > { %v937_v50 = vmul.f32 2.0, %v1263_v49 }
 0x317   : > { %938 = vst [vmem:[%s392_s12] sm:$0x3] %v937_v50 }
 0x318   : > { %1277 = shalt.err (!%p1274_p3)
}
 0x319   : > { %s1278_s30 = scalar_lea.hbm %s1651_s16, 32  ;;  %s1282_s12 = scalar_lea.hbm %s1704_s11, 160 }
 0x31a   : > { %p1279_p4 = scmp.ne.s32.totalorder %s1651_s16, %s1278_s30  ;;  %p1283_p9 = scmp.lt.u32.totalorder %s1651_s16, %s1704_s11 }
 0x31b   : > { %p1284_p10 = scmp.lt.u32.totalorder %s1282_s12, %s1278_s30  ;;  %p1286_p12 = scmp.lt.u32.totalorder %s1278_s30, %s1651_s16 }
 0x31c   : > { %p1280_p7 = pnand %p1279_p4, %p1431_p5 }
 0x31d   : > { %p1285_p11 = por %p1284_p10, %p1283_p9 }
 0x31e   : > { %p1281_p8 = pneg %p1280_p7 }
 0x31f   : > { %p1287_p13 = por %p1286_p12, %p1285_p11 }
 0x321   : > { %p1288_p0 = pnand %p1287_p13, %p1281_p8 }
 0x323   : > { %1291 = shalt.err (!%p1288_p0)
}
 0x324   : > { %1207 = dma.vmem_to_hbm [thread:$0]  (%p1431_p5), %s1653_s13, 32, %s1651_s16, %s940_s19  }
 0x325 PF: > { %p1213_p1 = scmp.ge.s32.totalorder %s1326_s20, 2  ;;  %s965_s22 = sand.u32 1, %s1314_s17  }
 0x326   : > { %s966_s21 = scalar_lea.sflag [#allocation3], %s965_s22 }
 0x327   : > { %p1210_p2 = pnand %p1213_p1, %p1435_p6 }
 0x329   : > { %1309 = dma.done.wait (!%p1210_p2), %s966_s21, 32  }
 0x32a   : > { %1311 = vsyncadd (!%p1210_p2), %s966_s21, 4294967264  ;;  %s1712_s24 = sld [smem:[#allocation5_spill]]  ;;  %s1713_s19 = sld [smem:[#allocation6_spill]] }
 0x32b   : > { %p21_p3 = scmp.ge.s32.totalorder %s1418_s23, 7   ;;  %s1714_s17 = smov %s1318_s18 }
 0x32c   : > { %s1716_s20 = smov %s1418_s23 }
 0x32d   :  { %23 = sbr.rel (!%p21_p3) target bundleno = 3 (0x3), region = 99 }
 0x330   : > { %s1715_s18 = smov %s1712_s24 }
 0x334   :  { %971 = vsyncpa [#allocation3], 1 }
 0x335   :  { %973 = vsyncpa [#allocation3 + $0x1], 1 }

</bundles_post_ra>
